<compile_context>
chip_gen: v7x
topology: tpu7x:2x2x1
jax: 0.10.0
libtpu: 0.0.40
codegen_flags: <defaults>
</compile_context>

<pallas_src>
import functools

import jax
import jax.numpy as jnp
from jax.experimental import pallas as pl
from jax.experimental.pallas import tpu as pltpu

# ---------------- config (small, consistent with the module) ----------------
VOCAB = 50          # config.vocab_size
HIDDEN = 32         # config.hidden_size
N_LAYERS = 2        # config.num_hidden_layers
N_HEADS = 4         # config.num_attention_heads
HEAD_DIM = HIDDEN // N_HEADS
INTER = 64          # config.intermediate_size
MAX_POS = 40        # config.max_position_embeddings
TYPE_VOCAB = 2      # config.type_vocab_size
PAD_IDX = 1         # config.pad_token_id (RoBERTa convention)
IMG_DIM = 16        # img_dim
POS_FEAT_DIM = 7    # pos_linear input dim
LN_EPS = 1e-12


# ---------------- single fused Pallas kernel ----------------
def _fused_forward_kernel(
    # activations / pre-gathered embeddings
    txt_ref, img_ref, posf_ref, person_ref, itype_ref, bias_ref,
    # text-embedding LayerNorm
    tg_ref, tb_ref,
    # image embeddings: img_linear + img_ln, pos_linear + pos_ln, person_ln, out_ln
    iw_ref, ib_ref, ig_ref, ibb_ref,
    pw_ref, pb_ref, pg_ref, pbb_ref,
    perg_ref, perb_ref,
    og_ref, ob_ref,
    # encoder layer 0 (fused QKV)
    wqkv_ref, bqkv_ref, wo_ref, bo_ref, ln1g_ref, ln1b_ref,
    wi_ref, bi_ref, wo2_ref, bo2_ref, ln2g_ref, ln2b_ref,
    # pooler
    poolw_ref, poolb_ref,
    # output
    pooled_ref,
    # scratch
    hid_ref, ctx_ref,
    *, batch, lt, li, s_pad):

    def ln(x, g_ref, b_ref):
        mu = jnp.mean(x, axis=-1, keepdims=True)
        var = jnp.mean(jnp.square(x - mu), axis=-1, keepdims=True)
        return (x - mu) * jax.lax.rsqrt(var + LN_EPS) * g_ref[...] + b_ref[...]

    def dense(x, w_ref, b_ref):
        return jnp.dot(x, w_ref[...], preferred_element_type=jnp.float32) + b_ref[...]

    # ---- text embeddings: LN(word + type + pos) ----
    txt_e = ln(txt_ref[...], tg_ref, tb_ref)                        # (B*Lt, H)

    # ---- image embeddings ----
    im = ln(dense(img_ref[...], iw_ref, ib_ref), ig_ref, ibb_ref)   # (B*Li, H)
    emb = im + itype_ref[...]                                       # + type embedding (id=1)
    emb = emb + ln(dense(posf_ref[...], pw_ref, pb_ref), pg_ref, pbb_ref)
    emb = emb + ln(person_ref[...], perg_ref, perb_ref)
    img_e = ln(emb, og_ref, ob_ref)                                 # (B*Li, H)
    # TODO(synk): img_masks / mask_embedding path skipped (img_masks=None in this run).

    # ---- assemble padded [B*S_pad, H] hidden states in VMEM ----
    hid_ref[...] = jnp.zeros_like(hid_ref)
    for b_i in range(batch):
        r0 = b_i * s_pad
        hid_ref[r0:r0 + lt, :] = txt_e[b_i * lt:(b_i + 1) * lt, :]
        hid_ref[r0 + lt:r0 + lt + li, :] = img_e[b_i * li:(b_i + 1) * li, :]
    hid = hid_ref[...]                                              # (B*S_pad, H)

    # ---- BertLayer 0 (only encoded_layers[0] feeds the pooler) ----
    qkv = dense(hid, wqkv_ref, bqkv_ref)                            # (B*S_pad, 3H)
    scale = 1.0 / float(HEAD_DIM) ** 0.5
    biasv = bias_ref[...]                                           # (B, S_pad)
    for b_i in range(batch):
        r0 = b_i * s_pad
        bias_b = biasv[b_i:b_i + 1, :]                              # (1, S_pad)
        for h_i in range(N_HEADS):
            c0 = h_i * HEAD_DIM
            qh = qkv[r0:r0 + s_pad, c0:c0 + HEAD_DIM]
            kh = qkv[r0:r0 + s_pad, HIDDEN + c0:HIDDEN + c0 + HEAD_DIM]
            vh = qkv[r0:r0 + s_pad, 2 * HIDDEN + c0:2 * HIDDEN + c0 + HEAD_DIM]
            att = jax.lax.dot_general(qh, kh, (((1,), (1,)), ((), ())),
                                      preferred_element_type=jnp.float32)
            att = att * scale + bias_b
            m = jnp.max(att, axis=-1, keepdims=True)
            e = jnp.exp(att - m)
            p = e / jnp.sum(e, axis=-1, keepdims=True)
            ctx_ref[r0:r0 + s_pad, c0:c0 + HEAD_DIM] = jnp.dot(
                p, vh, preferred_element_type=jnp.float32)

    attn_out = ln(dense(ctx_ref[...], wo_ref, bo_ref) + hid, ln1g_ref, ln1b_ref)
    inter = dense(attn_out, wi_ref, bi_ref)
    inter = 0.5 * inter * (1.0 + jax.lax.erf(inter * 0.7071067811865476))  # erf gelu
    seq0 = ln(dense(inter, wo2_ref, bo2_ref) + attn_out, ln2g_ref, ln2b_ref)

    # ---- RobertaPooler: tanh(dense(first token of each batch)) ----
    pooled_all = jnp.tanh(dense(seq0, poolw_ref, poolb_ref))
    for b_i in range(batch):
        pooled_ref[b_i:b_i + 1, :] = pooled_all[b_i * s_pad:b_i * s_pad + 1, :]


# ---------------- deterministic parameter init ----------------
def init_params(key):
    keys = iter(jax.random.split(key, 64))
    n = lambda shape: 0.02 * jax.random.normal(next(keys), shape, dtype=jnp.float32)
    z = lambda shape: jnp.zeros(shape, jnp.float32)
    o = lambda shape: jnp.ones(shape, jnp.float32)

    p = {}
    # ImageRobertaTextEmbeddings
    p["word_emb"] = n((VOCAB, HIDDEN))
    p["pos_emb"] = n((MAX_POS, HIDDEN))
    p["type_emb"] = n((TYPE_VOCAB, HIDDEN))
    p["txt_ln_g"], p["txt_ln_b"] = o((HIDDEN,)), z((HIDDEN,))
    # ImageRobertaImageEmbeddings
    p["img_w"], p["img_b"] = n((IMG_DIM, HIDDEN)), z((HIDDEN,))
    p["img_ln_g"], p["img_ln_b"] = o((HIDDEN,)), z((HIDDEN,))
    p["posf_w"], p["posf_b"] = n((POS_FEAT_DIM, HIDDEN)), z((HIDDEN,))
    p["posf_ln_g"], p["posf_ln_b"] = o((HIDDEN,)), z((HIDDEN,))
    p["person_emb"] = n((VOCAB, HIDDEN))
    p["person_ln_g"], p["person_ln_b"] = o((HIDDEN,)), z((HIDDEN,))
    p["imgout_ln_g"], p["imgout_ln_b"] = o((HIDDEN,)), z((HIDDEN,))
    # UniterEncoder (BertLayer x N) — only layer 0 reaches the pooled output.
    p["layers"] = []
    for _ in range(N_LAYERS):
        p["layers"].append({
            "wq": n((HIDDEN, HIDDEN)), "bq": z((HIDDEN,)),
            "wk": n((HIDDEN, HIDDEN)), "bk": z((HIDDEN,)),
            "wv": n((HIDDEN, HIDDEN)), "bv": z((HIDDEN,)),
            "wo": n((HIDDEN, HIDDEN)), "bo": z((HIDDEN,)),
            "ln1_g": o((HIDDEN,)), "ln1_b": z((HIDDEN,)),
            "wi": n((HIDDEN, INTER)), "bi": z((INTER,)),
            "wo2": n((INTER, HIDDEN)), "bo2": z((HIDDEN,)),
            "ln2_g": o((HIDDEN,)), "ln2_b": z((HIDDEN,)),
        })
    # RobertaPooler
    p["pool_w"], p["pool_b"] = n((HIDDEN, HIDDEN)), z((HIDDEN,))
    return p


# ---------------- forward pass (matches ImageRobertaModel.forward) ----------------
@jax.jit
def forward(params, input_ids, attention_mask, img_feat, img_pos_feat, person_ids):
    B, Lt = input_ids.shape
    Li = img_feat.shape[1]
    H = HIDDEN
    S = Lt + Li
    S_pad = ((S + 7) // 8) * 8        # sublane-aligned padded sequence length

    # ----- embedding gathers (plain JAX: no clean Pallas gather at this size) -----
    tmask = (input_ids != PAD_IDX).astype(jnp.int32)
    position_ids = jnp.cumsum(tmask, axis=1) * tmask + PAD_IDX   # create_position_ids_from_input_ids
    txt_sum = (params["word_emb"][input_ids]
               + params["type_emb"][0][None, None, :]            # token_type_ids = 0
               + params["pos_emb"][position_ids]).reshape(B * Lt, H)
    person = params["person_emb"][person_ids].reshape(B * Li, H)
    img_type = params["type_emb"][1].reshape(1, H)               # img_type_ids = 1

    # extended attention mask bias, with padded key columns masked out
    bias = (1.0 - attention_mask.astype(jnp.float32)) * -10000.0
    bias = jnp.pad(bias, ((0, 0), (0, S_pad - S)), constant_values=-10000.0)

    # fused QKV weights for layer 0 (layers 1.. are dead compute: sequence_output
    # = encoded_layers[0] in the reference)
    lp = params["layers"][0]
    wqkv = jnp.concatenate([lp["wq"], lp["wk"], lp["wv"]], axis=1)        # (H, 3H)
    bqkv = jnp.concatenate([lp["bq"], lp["bk"], lp["bv"]]).reshape(1, 3 * H)

    row = lambda v: v.reshape(1, -1)
    args = (
        txt_sum,
        img_feat.reshape(B * Li, IMG_DIM).astype(jnp.float32),
        img_pos_feat.reshape(B * Li, POS_FEAT_DIM).astype(jnp.float32),
        person,
        img_type,
        bias,
        row(params["txt_ln_g"]), row(params["txt_ln_b"]),
        params["img_w"], row(params["img_b"]),
        row(params["img_ln_g"]), row(params["img_ln_b"]),
        params["posf_w"], row(params["posf_b"]),
        row(params["posf_ln_g"]), row(params["posf_ln_b"]),
        row(params["person_ln_g"]), row(params["person_ln_b"]),
        row(params["imgout_ln_g"]), row(params["imgout_ln_b"]),
        wqkv, bqkv,
        lp["wo"], row(lp["bo"]), row(lp["ln1_g"]), row(lp["ln1_b"]),
        lp["wi"], row(lp["bi"]), lp["wo2"], row(lp["bo2"]),
        row(lp["ln2_g"]), row(lp["ln2_b"]),
        params["pool_w"], row(params["pool_b"]),
    )

    kernel = functools.partial(_fused_forward_kernel,
                               batch=B, lt=Lt, li=Li, s_pad=S_pad)
    return pl.pallas_call(
        kernel,
        out_shape=jax.ShapeDtypeStruct((B, H), jnp.float32),
        in_specs=[pl.BlockSpec(memory_space=pltpu.MemorySpace.VMEM)] * len(args),
        out_specs=pl.BlockSpec(memory_space=pltpu.MemorySpace.VMEM),
        scratch_shapes=[pltpu.VMEM((B * S_pad, H), jnp.float32),   # padded hidden states
                        pltpu.VMEM((B * S_pad, H), jnp.float32)],  # attention context
    )(*args)


if __name__ == "__main__":
    key = jax.random.PRNGKey(0)
    pk, k1, k2, k3, k4 = jax.random.split(key, 5)
    params = init_params(pk)

    B, Lt, Li = 2, 8, 6
    input_ids = jax.random.randint(k1, (B, Lt), 2, VOCAB)
    input_ids = input_ids.at[:, -1].set(PAD_IDX)                      # some padding tokens
    img_feat = jax.random.normal(k2, (B, Li, IMG_DIM), dtype=jnp.float32)
    img_pos_feat = jax.random.uniform(k3, (B, Li, POS_FEAT_DIM), dtype=jnp.float32)
    person_ids = jax.random.randint(k4, (B, Li), 0, VOCAB)
    attention_mask = jnp.ones((B, Lt + Li), jnp.float32)
    attention_mask = attention_mask.at[1, -2:].set(0.0)               # mask a couple of positions

    pooled = forward(params, input_ids, attention_mask, img_feat, img_pos_feat, person_ids)
    jax.block_until_ready(pooled)
    assert pooled.shape == (B, HIDDEN) and pooled.dtype == jnp.float32
    assert bool(jnp.all(jnp.isfinite(pooled)))
    print("KERNEL_OK")
</pallas_src>

<mosaic_0001>
module attributes {stable_mosaic.version = 11 : i64} {
  func.func @_fused_forward_kernel(%arg0: memref<16x32xf32, #tpu.memory_space<vmem>>, %arg1: memref<12x16xf32, #tpu.memory_space<vmem>>, %arg2: memref<12x7xf32, #tpu.memory_space<vmem>>, %arg3: memref<12x32xf32, #tpu.memory_space<vmem>>, %arg4: memref<1x32xf32, #tpu.memory_space<vmem>>, %arg5: memref<2x16xf32, #tpu.memory_space<vmem>>, %arg6: memref<1x32xf32, #tpu.memory_space<vmem>>, %arg7: memref<1x32xf32, #tpu.memory_space<vmem>>, %arg8: memref<16x32xf32, #tpu.memory_space<vmem>>, %arg9: memref<1x32xf32, #tpu.memory_space<vmem>>, %arg10: memref<1x32xf32, #tpu.memory_space<vmem>>, %arg11: memref<1x32xf32, #tpu.memory_space<vmem>>, %arg12: memref<7x32xf32, #tpu.memory_space<vmem>>, %arg13: memref<1x32xf32, #tpu.memory_space<vmem>>, %arg14: memref<1x32xf32, #tpu.memory_space<vmem>>, %arg15: memref<1x32xf32, #tpu.memory_space<vmem>>, %arg16: memref<1x32xf32, #tpu.memory_space<vmem>>, %arg17: memref<1x32xf32, #tpu.memory_space<vmem>>, %arg18: memref<1x32xf32, #tpu.memory_space<vmem>>, %arg19: memref<1x32xf32, #tpu.memory_space<vmem>>, %arg20: memref<32x96xf32, #tpu.memory_space<vmem>>, %arg21: memref<1x96xf32, #tpu.memory_space<vmem>>, %arg22: memref<32x32xf32, #tpu.memory_space<vmem>>, %arg23: memref<1x32xf32, #tpu.memory_space<vmem>>, %arg24: memref<1x32xf32, #tpu.memory_space<vmem>>, %arg25: memref<1x32xf32, #tpu.memory_space<vmem>>, %arg26: memref<32x64xf32, #tpu.memory_space<vmem>>, %arg27: memref<1x64xf32, #tpu.memory_space<vmem>>, %arg28: memref<64x32xf32, #tpu.memory_space<vmem>>, %arg29: memref<1x32xf32, #tpu.memory_space<vmem>>, %arg30: memref<1x32xf32, #tpu.memory_space<vmem>>, %arg31: memref<1x32xf32, #tpu.memory_space<vmem>>, %arg32: memref<32x32xf32, #tpu.memory_space<vmem>>, %arg33: memref<1x32xf32, #tpu.memory_space<vmem>>, %arg34: memref<2x32xf32, #tpu.memory_space<vmem>>, %arg35: memref<32x32xf32, #tpu.memory_space<vmem>>, %arg36: memref<32x32xf32, #tpu.memory_space<vmem>>) attributes {dimension_semantics = [], scalar_prefetch = 0 : i64, scratch_operands = 2 : i64, tpu.core_type = #tpu.core_type<tc>} {
    %c0 = arith.constant 0 : index
    %c0_0 = arith.constant 0 : index
    %0 = vector.load %arg0[%c0, %c0_0] : memref<16x32xf32, #tpu.memory_space<vmem>>, vector<16x32xf32>
    %cst = arith.constant dense<0.000000e+00> : vector<16xf32>
    %1 = vector.multi_reduction <add>, %0, %cst [1] : vector<16x32xf32> to vector<16xf32>
    %2 = vector.shape_cast %1 : vector<16xf32> to vector<16x1xf32>
    %cst_1 = arith.constant 3.200000e+01 : f32
    %3 = vector.broadcast %cst_1 : f32 to vector<16x1xf32>
    %4 = arith.divf %2, %3 : vector<16x1xf32>
    %5 = vector.broadcast %4 : vector<16x1xf32> to vector<16x32xf32>
    %6 = arith.subf %0, %5 : vector<16x32xf32>
    %7 = arith.mulf %6, %6 : vector<16x32xf32>
    %cst_2 = arith.constant dense<0.000000e+00> : vector<16xf32>
    %8 = vector.multi_reduction <add>, %7, %cst_2 [1] : vector<16x32xf32> to vector<16xf32>
    %9 = vector.shape_cast %8 : vector<16xf32> to vector<16x1xf32>
    %cst_3 = arith.constant 3.200000e+01 : f32
    %10 = vector.broadcast %cst_3 : f32 to vector<16x1xf32>
    %11 = arith.divf %9, %10 : vector<16x1xf32>
    %12 = vector.broadcast %4 : vector<16x1xf32> to vector<16x32xf32>
    %13 = arith.subf %0, %12 : vector<16x32xf32>
    %cst_4 = arith.constant 9.99999996E-13 : f32
    %14 = vector.broadcast %cst_4 : f32 to vector<16x1xf32>
    %15 = arith.addf %11, %14 : vector<16x1xf32>
    %16 = math.rsqrt %15 : vector<16x1xf32>
    %17 = vector.broadcast %16 : vector<16x1xf32> to vector<16x32xf32>
    %18 = arith.mulf %13, %17 : vector<16x32xf32>
    %c0_5 = arith.constant 0 : index
    %c0_6 = arith.constant 0 : index
    %19 = vector.load %arg6[%c0_5, %c0_6] : memref<1x32xf32, #tpu.memory_space<vmem>>, vector<1x32xf32>
    %20 = vector.broadcast %19 : vector<1x32xf32> to vector<16x32xf32>
    %21 = arith.mulf %18, %20 : vector<16x32xf32>
    %c0_7 = arith.constant 0 : index
    %c0_8 = arith.constant 0 : index
    %22 = vector.load %arg7[%c0_7, %c0_8] : memref<1x32xf32, #tpu.memory_space<vmem>>, vector<1x32xf32>
    %23 = vector.broadcast %22 : vector<1x32xf32> to vector<16x32xf32>
    %24 = arith.addf %21, %23 : vector<16x32xf32>
    %c0_9 = arith.constant 0 : index
    %c0_10 = arith.constant 0 : index
    %25 = vector.load %arg1[%c0_9, %c0_10] : memref<12x16xf32, #tpu.memory_space<vmem>>, vector<12x16xf32>
    %c0_11 = arith.constant 0 : index
    %c0_12 = arith.constant 0 : index
    %26 = vector.load %arg8[%c0_11, %c0_12] : memref<16x32xf32, #tpu.memory_space<vmem>>, vector<16x32xf32>
    %cst_13 = arith.constant dense<0.000000e+00> : vector<12x32xf32>
    %27 = tpu.matmul %25, %26, %cst_13 {dimension_numbers = #tpu.dot_dimension_numbers<[1], [0], [0], [1], [0, 0, 1, 1], [], []>} : vector<12x16xf32>, vector<16x32xf32>, vector<12x32xf32> -> vector<12x32xf32>
    %c0_14 = arith.constant 0 : index
    %c0_15 = arith.constant 0 : index
    %28 = vector.load %arg9[%c0_14, %c0_15] : memref<1x32xf32, #tpu.memory_space<vmem>>, vector<1x32xf32>
    %29 = vector.broadcast %28 : vector<1x32xf32> to vector<12x32xf32>
    %30 = arith.addf %27, %29 : vector<12x32xf32>
    %cst_16 = arith.constant dense<0.000000e+00> : vector<12xf32>
    %31 = vector.multi_reduction <add>, %30, %cst_16 [1] : vector<12x32xf32> to vector<12xf32>
    %32 = vector.shape_cast %31 : vector<12xf32> to vector<12x1xf32>
    %cst_17 = arith.constant 3.200000e+01 : f32
    %33 = vector.broadcast %cst_17 : f32 to vector<12x1xf32>
    %34 = arith.divf %32, %33 : vector<12x1xf32>
    %35 = vector.broadcast %34 : vector<12x1xf32> to vector<12x32xf32>
    %36 = arith.subf %30, %35 : vector<12x32xf32>
    %37 = arith.mulf %36, %36 : vector<12x32xf32>
    %cst_18 = arith.constant dense<0.000000e+00> : vector<12xf32>
    %38 = vector.multi_reduction <add>, %37, %cst_18 [1] : vector<12x32xf32> to vector<12xf32>
    %39 = vector.shape_cast %38 : vector<12xf32> to vector<12x1xf32>
    %cst_19 = arith.constant 3.200000e+01 : f32
    %40 = vector.broadcast %cst_19 : f32 to vector<12x1xf32>
    %41 = arith.divf %39, %40 : vector<12x1xf32>
    %42 = vector.broadcast %34 : vector<12x1xf32> to vector<12x32xf32>
    %43 = arith.subf %30, %42 : vector<12x32xf32>
    %cst_20 = arith.constant 9.99999996E-13 : f32
    %44 = vector.broadcast %cst_20 : f32 to vector<12x1xf32>
    %45 = arith.addf %41, %44 : vector<12x1xf32>
    %46 = math.rsqrt %45 : vector<12x1xf32>
    %47 = vector.broadcast %46 : vector<12x1xf32> to vector<12x32xf32>
    %48 = arith.mulf %43, %47 : vector<12x32xf32>
    %c0_21 = arith.constant 0 : index
    %c0_22 = arith.constant 0 : index
    %49 = vector.load %arg10[%c0_21, %c0_22] : memref<1x32xf32, #tpu.memory_space<vmem>>, vector<1x32xf32>
    %50 = vector.broadcast %49 : vector<1x32xf32> to vector<12x32xf32>
    %51 = arith.mulf %48, %50 : vector<12x32xf32>
    %c0_23 = arith.constant 0 : index
    %c0_24 = arith.constant 0 : index
    %52 = vector.load %arg11[%c0_23, %c0_24] : memref<1x32xf32, #tpu.memory_space<vmem>>, vector<1x32xf32>
    %53 = vector.broadcast %52 : vector<1x32xf32> to vector<12x32xf32>
    %54 = arith.addf %51, %53 : vector<12x32xf32>
    %c0_25 = arith.constant 0 : index
    %c0_26 = arith.constant 0 : index
    %55 = vector.load %arg4[%c0_25, %c0_26] : memref<1x32xf32, #tpu.memory_space<vmem>>, vector<1x32xf32>
    %56 = vector.broadcast %55 : vector<1x32xf32> to vector<12x32xf32>
    %57 = arith.addf %54, %56 : vector<12x32xf32>
    %c0_27 = arith.constant 0 : index
    %c0_28 = arith.constant 0 : index
    %58 = vector.load %arg2[%c0_27, %c0_28] : memref<12x7xf32, #tpu.memory_space<vmem>>, vector<12x7xf32>
    %c0_29 = arith.constant 0 : index
    %c0_30 = arith.constant 0 : index
    %59 = vector.load %arg12[%c0_29, %c0_30] : memref<7x32xf32, #tpu.memory_space<vmem>>, vector<7x32xf32>
    %cst_31 = arith.constant dense<0.000000e+00> : vector<12x32xf32>
    %60 = tpu.matmul %58, %59, %cst_31 {dimension_numbers = #tpu.dot_dimension_numbers<[1], [0], [0], [1], [0, 0, 1, 1], [], []>} : vector<12x7xf32>, vector<7x32xf32>, vector<12x32xf32> -> vector<12x32xf32>
    %c0_32 = arith.constant 0 : index
    %c0_33 = arith.constant 0 : index
    %61 = vector.load %arg13[%c0_32, %c0_33] : memref<1x32xf32, #tpu.memory_space<vmem>>, vector<1x32xf32>
    %62 = vector.broadcast %61 : vector<1x32xf32> to vector<12x32xf32>
    %63 = arith.addf %60, %62 : vector<12x32xf32>
    %cst_34 = arith.constant dense<0.000000e+00> : vector<12xf32>
    %64 = vector.multi_reduction <add>, %63, %cst_34 [1] : vector<12x32xf32> to vector<12xf32>
    %65 = vector.shape_cast %64 : vector<12xf32> to vector<12x1xf32>
    %cst_35 = arith.constant 3.200000e+01 : f32
    %66 = vector.broadcast %cst_35 : f32 to vector<12x1xf32>
    %67 = arith.divf %65, %66 : vector<12x1xf32>
    %68 = vector.broadcast %67 : vector<12x1xf32> to vector<12x32xf32>
    %69 = arith.subf %63, %68 : vector<12x32xf32>
    %70 = arith.mulf %69, %69 : vector<12x32xf32>
    %cst_36 = arith.constant dense<0.000000e+00> : vector<12xf32>
    %71 = vector.multi_reduction <add>, %70, %cst_36 [1] : vector<12x32xf32> to vector<12xf32>
    %72 = vector.shape_cast %71 : vector<12xf32> to vector<12x1xf32>
    %cst_37 = arith.constant 3.200000e+01 : f32
    %73 = vector.broadcast %cst_37 : f32 to vector<12x1xf32>
    %74 = arith.divf %72, %73 : vector<12x1xf32>
    %75 = vector.broadcast %67 : vector<12x1xf32> to vector<12x32xf32>
    %76 = arith.subf %63, %75 : vector<12x32xf32>
    %cst_38 = arith.constant 9.99999996E-13 : f32
    %77 = vector.broadcast %cst_38 : f32 to vector<12x1xf32>
    %78 = arith.addf %74, %77 : vector<12x1xf32>
    %79 = math.rsqrt %78 : vector<12x1xf32>
    %80 = vector.broadcast %79 : vector<12x1xf32> to vector<12x32xf32>
    %81 = arith.mulf %76, %80 : vector<12x32xf32>
    %c0_39 = arith.constant 0 : index
    %c0_40 = arith.constant 0 : index
    %82 = vector.load %arg14[%c0_39, %c0_40] : memref<1x32xf32, #tpu.memory_space<vmem>>, vector<1x32xf32>
    %83 = vector.broadcast %82 : vector<1x32xf32> to vector<12x32xf32>
    %84 = arith.mulf %81, %83 : vector<12x32xf32>
    %c0_41 = arith.constant 0 : index
    %c0_42 = arith.constant 0 : index
    %85 = vector.load %arg15[%c0_41, %c0_42] : memref<1x32xf32, #tpu.memory_space<vmem>>, vector<1x32xf32>
    %86 = vector.broadcast %85 : vector<1x32xf32> to vector<12x32xf32>
    %87 = arith.addf %84, %86 : vector<12x32xf32>
    %88 = arith.addf %57, %87 : vector<12x32xf32>
    %c0_43 = arith.constant 0 : index
    %c0_44 = arith.constant 0 : index
    %89 = vector.load %arg3[%c0_43, %c0_44] : memref<12x32xf32, #tpu.memory_space<vmem>>, vector<12x32xf32>
    %cst_45 = arith.constant dense<0.000000e+00> : vector<12xf32>
    %90 = vector.multi_reduction <add>, %89, %cst_45 [1] : vector<12x32xf32> to vector<12xf32>
    %91 = vector.shape_cast %90 : vector<12xf32> to vector<12x1xf32>
    %cst_46 = arith.constant 3.200000e+01 : f32
    %92 = vector.broadcast %cst_46 : f32 to vector<12x1xf32>
    %93 = arith.divf %91, %92 : vector<12x1xf32>
    %94 = vector.broadcast %93 : vector<12x1xf32> to vector<12x32xf32>
    %95 = arith.subf %89, %94 : vector<12x32xf32>
    %96 = arith.mulf %95, %95 : vector<12x32xf32>
    %cst_47 = arith.constant dense<0.000000e+00> : vector<12xf32>
    %97 = vector.multi_reduction <add>, %96, %cst_47 [1] : vector<12x32xf32> to vector<12xf32>
    %98 = vector.shape_cast %97 : vector<12xf32> to vector<12x1xf32>
    %cst_48 = arith.constant 3.200000e+01 : f32
    %99 = vector.broadcast %cst_48 : f32 to vector<12x1xf32>
    %100 = arith.divf %98, %99 : vector<12x1xf32>
    %101 = vector.broadcast %93 : vector<12x1xf32> to vector<12x32xf32>
    %102 = arith.subf %89, %101 : vector<12x32xf32>
    %cst_49 = arith.constant 9.99999996E-13 : f32
    %103 = vector.broadcast %cst_49 : f32 to vector<12x1xf32>
    %104 = arith.addf %100, %103 : vector<12x1xf32>
    %105 = math.rsqrt %104 : vector<12x1xf32>
    %106 = vector.broadcast %105 : vector<12x1xf32> to vector<12x32xf32>
    %107 = arith.mulf %102, %106 : vector<12x32xf32>
    %c0_50 = arith.constant 0 : index
    %c0_51 = arith.constant 0 : index
    %108 = vector.load %arg16[%c0_50, %c0_51] : memref<1x32xf32, #tpu.memory_space<vmem>>, vector<1x32xf32>
    %109 = vector.broadcast %108 : vector<1x32xf32> to vector<12x32xf32>
    %110 = arith.mulf %107, %109 : vector<12x32xf32>
    %c0_52 = arith.constant 0 : index
    %c0_53 = arith.constant 0 : index
    %111 = vector.load %arg17[%c0_52, %c0_53] : memref<1x32xf32, #tpu.memory_space<vmem>>, vector<1x32xf32>
    %112 = vector.broadcast %111 : vector<1x32xf32> to vector<12x32xf32>
    %113 = arith.addf %110, %112 : vector<12x32xf32>
    %114 = arith.addf %88, %113 : vector<12x32xf32>
    %cst_54 = arith.constant dense<0.000000e+00> : vector<12xf32>
    %115 = vector.multi_reduction <add>, %114, %cst_54 [1] : vector<12x32xf32> to vector<12xf32>
    %116 = vector.shape_cast %115 : vector<12xf32> to vector<12x1xf32>
    %cst_55 = arith.constant 3.200000e+01 : f32
    %117 = vector.broadcast %cst_55 : f32 to vector<12x1xf32>
    %118 = arith.divf %116, %117 : vector<12x1xf32>
    %119 = vector.broadcast %118 : vector<12x1xf32> to vector<12x32xf32>
    %120 = arith.subf %114, %119 : vector<12x32xf32>
    %121 = arith.mulf %120, %120 : vector<12x32xf32>
    %cst_56 = arith.constant dense<0.000000e+00> : vector<12xf32>
    %122 = vector.multi_reduction <add>, %121, %cst_56 [1] : vector<12x32xf32> to vector<12xf32>
    %123 = vector.shape_cast %122 : vector<12xf32> to vector<12x1xf32>
    %cst_57 = arith.constant 3.200000e+01 : f32
    %124 = vector.broadcast %cst_57 : f32 to vector<12x1xf32>
    %125 = arith.divf %123, %124 : vector<12x1xf32>
    %126 = vector.broadcast %118 : vector<12x1xf32> to vector<12x32xf32>
    %127 = arith.subf %114, %126 : vector<12x32xf32>
    %cst_58 = arith.constant 9.99999996E-13 : f32
    %128 = vector.broadcast %cst_58 : f32 to vector<12x1xf32>
    %129 = arith.addf %125, %128 : vector<12x1xf32>
    %130 = math.rsqrt %129 : vector<12x1xf32>
    %131 = vector.broadcast %130 : vector<12x1xf32> to vector<12x32xf32>
    %132 = arith.mulf %127, %131 : vector<12x32xf32>
    %c0_59 = arith.constant 0 : index
    %c0_60 = arith.constant 0 : index
    %133 = vector.load %arg18[%c0_59, %c0_60] : memref<1x32xf32, #tpu.memory_space<vmem>>, vector<1x32xf32>
    %134 = vector.broadcast %133 : vector<1x32xf32> to vector<12x32xf32>
    %135 = arith.mulf %132, %134 : vector<12x32xf32>
    %c0_61 = arith.constant 0 : index
    %c0_62 = arith.constant 0 : index
    %136 = vector.load %arg19[%c0_61, %c0_62] : memref<1x32xf32, #tpu.memory_space<vmem>>, vector<1x32xf32>
    %137 = vector.broadcast %136 : vector<1x32xf32> to vector<12x32xf32>
    %138 = arith.addf %135, %137 : vector<12x32xf32>
    %cst_63 = arith.constant 0.000000e+00 : f32
    %139 = vector.broadcast %cst_63 : f32 to vector<32x32xf32>
    %c0_64 = arith.constant 0 : index
    %c0_65 = arith.constant 0 : index
    %140 = vector.load %arg35[%c0_64, %c0_65] : memref<32x32xf32, #tpu.memory_space<vmem>>, vector<32x32xf32>
    tpu.vector_store %arg35[%c0_64, %c0_65], %139 {strides = array<i32>} : memref<32x32xf32, #tpu.memory_space<vmem>>, vector<32x32xf32>,
    %141 = vector.extract_strided_slice %24 {offsets = [0, 0], sizes = [8, 32], strides = [1, 1]} : vector<16x32xf32> to vector<8x32xf32>
    %c0_66 = arith.constant 0 : index
    %c0_67 = arith.constant 0 : index
    %142 = vector.load %arg35[%c0_66, %c0_67] : memref<32x32xf32, #tpu.memory_space<vmem>>, vector<8x32xf32>
    tpu.vector_store %arg35[%c0_66, %c0_67], %141 {strides = array<i32>} : memref<32x32xf32, #tpu.memory_space<vmem>>, vector<8x32xf32>,
    %143 = vector.extract_strided_slice %138 {offsets = [0, 0], sizes = [6, 32], strides = [1, 1]} : vector<12x32xf32> to vector<6x32xf32>
    %c8 = arith.constant 8 : index
    %c0_68 = arith.constant 0 : index
    %144 = vector.load %arg35[%c8, %c0_68] : memref<32x32xf32, #tpu.memory_space<vmem>>, vector<6x32xf32>
    tpu.vector_store %arg35[%c8, %c0_68], %143 {strides = array<i32>} : memref<32x32xf32, #tpu.memory_space<vmem>>, vector<6x32xf32>,
    %145 = vector.extract_strided_slice %24 {offsets = [8, 0], sizes = [8, 32], strides = [1, 1]} : vector<16x32xf32> to vector<8x32xf32>
    %c16 = arith.constant 16 : index
    %c0_69 = arith.constant 0 : index
    %146 = vector.load %arg35[%c16, %c0_69] : memref<32x32xf32, #tpu.memory_space<vmem>>, vector<8x32xf32>
    tpu.vector_store %arg35[%c16, %c0_69], %145 {strides = array<i32>} : memref<32x32xf32, #tpu.memory_space<vmem>>, vector<8x32xf32>,
    %147 = vector.extract_strided_slice %138 {offsets = [6, 0], sizes = [6, 32], strides = [1, 1]} : vector<12x32xf32> to vector<6x32xf32>
    %c24 = arith.constant 24 : index
    %c0_70 = arith.constant 0 : index
    %148 = vector.load %arg35[%c24, %c0_70] : memref<32x32xf32, #tpu.memory_space<vmem>>, vector<6x32xf32>
    tpu.vector_store %arg35[%c24, %c0_70], %147 {strides = array<i32>} : memref<32x32xf32, #tpu.memory_space<vmem>>, vector<6x32xf32>,
    %c0_71 = arith.constant 0 : index
    %c0_72 = arith.constant 0 : index
    %149 = vector.load %arg35[%c0_71, %c0_72] : memref<32x32xf32, #tpu.memory_space<vmem>>, vector<32x32xf32>
    %c0_73 = arith.constant 0 : index
    %c0_74 = arith.constant 0 : index
    %150 = vector.load %arg20[%c0_73, %c0_74] : memref<32x96xf32, #tpu.memory_space<vmem>>, vector<32x96xf32>
    %cst_75 = arith.constant dense<0.000000e+00> : vector<32x96xf32>
    %151 = tpu.matmul %149, %150, %cst_75 {dimension_numbers = #tpu.dot_dimension_numbers<[1], [0], [0], [1], [0, 0, 1, 1], [], []>} : vector<32x32xf32>, vector<32x96xf32>, vector<32x96xf32> -> vector<32x96xf32>
    %c0_76 = arith.constant 0 : index
    %c0_77 = arith.constant 0 : index
    %152 = vector.load %arg21[%c0_76, %c0_77] : memref<1x96xf32, #tpu.memory_space<vmem>>, vector<1x96xf32>
    %153 = vector.broadcast %152 : vector<1x96xf32> to vector<32x96xf32>
    %154 = arith.addf %151, %153 : vector<32x96xf32>
    %c0_78 = arith.constant 0 : index
    %c0_79 = arith.constant 0 : index
    %155 = vector.load %arg5[%c0_78, %c0_79] : memref<2x16xf32, #tpu.memory_space<vmem>>, vector<2x16xf32>
    %156 = vector.extract_strided_slice %155 {offsets = [0, 0], sizes = [1, 16], strides = [1, 1]} : vector<2x16xf32> to vector<1x16xf32>
    %157 = vector.extract_strided_slice %154 {offsets = [0, 0], sizes = [16, 8], strides = [1, 1]} : vector<32x96xf32> to vector<16x8xf32>
    %158 = vector.extract_strided_slice %154 {offsets = [0, 32], sizes = [16, 8], strides = [1, 1]} : vector<32x96xf32> to vector<16x8xf32>
    %159 = vector.extract_strided_slice %154 {offsets = [0, 64], sizes = [16, 8], strides = [1, 1]} : vector<32x96xf32> to vector<16x8xf32>
    %cst_80 = arith.constant dense<0.000000e+00> : vector<16x16xf32>
    %160 = tpu.matmul %157, %158, %cst_80 {dimension_numbers = #tpu.dot_dimension_numbers<[1], [1], [0], [0], [0, 0, 1, 0], [], []>} : vector<16x8xf32>, vector<16x8xf32>, vector<16x16xf32> -> vector<16x16xf32>
    %cst_81 = arith.constant 0.353553385 : f32
    %161 = vector.broadcast %cst_81 : f32 to vector<16x16xf32>
    %162 = arith.mulf %160, %161 : vector<16x16xf32>
    %163 = vector.broadcast %156 : vector<1x16xf32> to vector<16x16xf32>
    %164 = arith.addf %162, %163 : vector<16x16xf32>
    %cst_82 = arith.constant dense<0xFF800000> : vector<16xf32>
    %165 = vector.multi_reduction <maximumf>, %164, %cst_82 [1] : vector<16x16xf32> to vector<16xf32>
    %166 = vector.shape_cast %165 : vector<16xf32> to vector<16x1xf32>
    %167 = vector.broadcast %166 : vector<16x1xf32> to vector<16x16xf32>
    %168 = arith.subf %164, %167 : vector<16x16xf32>
    %169 = math.exp %168 : vector<16x16xf32>
    %cst_83 = arith.constant dense<0.000000e+00> : vector<16xf32>
    %170 = vector.multi_reduction <add>, %169, %cst_83 [1] : vector<16x16xf32> to vector<16xf32>
    %171 = vector.shape_cast %170 : vector<16xf32> to vector<16x1xf32>
    %172 = vector.broadcast %171 : vector<16x1xf32> to vector<16x16xf32>
    %173 = arith.divf %169, %172 : vector<16x16xf32>
    %cst_84 = arith.constant dense<0.000000e+00> : vector<16x8xf32>
    %174 = tpu.matmul %173, %159, %cst_84 {dimension_numbers = #tpu.dot_dimension_numbers<[1], [0], [0], [1], [0, 0, 1, 1], [], []>} : vector<16x16xf32>, vector<16x8xf32>, vector<16x8xf32> -> vector<16x8xf32>
    %c0_85 = arith.constant 0 : index
    %c0_86 = arith.constant 0 : index
    %175 = vector.load %arg36[%c0_85, %c0_86] : memref<32x32xf32, #tpu.memory_space<vmem>>, vector<16x8xf32>
    tpu.vector_store %arg36[%c0_85, %c0_86], %174 {strides = array<i32>} : memref<32x32xf32, #tpu.memory_space<vmem>>, vector<16x8xf32>,
    %176 = vector.extract_strided_slice %154 {offsets = [0, 8], sizes = [16, 8], strides = [1, 1]} : vector<32x96xf32> to vector<16x8xf32>
    %177 = vector.extract_strided_slice %154 {offsets = [0, 40], sizes = [16, 8], strides = [1, 1]} : vector<32x96xf32> to vector<16x8xf32>
    %178 = vector.extract_strided_slice %154 {offsets = [0, 72], sizes = [16, 8], strides = [1, 1]} : vector<32x96xf32> to vector<16x8xf32>
    %cst_87 = arith.constant dense<0.000000e+00> : vector<16x16xf32>
    %179 = tpu.matmul %176, %177, %cst_87 {dimension_numbers = #tpu.dot_dimension_numbers<[1], [1], [0], [0], [0, 0, 1, 0], [], []>} : vector<16x8xf32>, vector<16x8xf32>, vector<16x16xf32> -> vector<16x16xf32>
    %cst_88 = arith.constant 0.353553385 : f32
    %180 = vector.broadcast %cst_88 : f32 to vector<16x16xf32>
    %181 = arith.mulf %179, %180 : vector<16x16xf32>
    %182 = vector.broadcast %156 : vector<1x16xf32> to vector<16x16xf32>
    %183 = arith.addf %181, %182 : vector<16x16xf32>
    %cst_89 = arith.constant dense<0xFF800000> : vector<16xf32>
    %184 = vector.multi_reduction <maximumf>, %183, %cst_89 [1] : vector<16x16xf32> to vector<16xf32>
    %185 = vector.shape_cast %184 : vector<16xf32> to vector<16x1xf32>
    %186 = vector.broadcast %185 : vector<16x1xf32> to vector<16x16xf32>
    %187 = arith.subf %183, %186 : vector<16x16xf32>
    %188 = math.exp %187 : vector<16x16xf32>
    %cst_90 = arith.constant dense<0.000000e+00> : vector<16xf32>
    %189 = vector.multi_reduction <add>, %188, %cst_90 [1] : vector<16x16xf32> to vector<16xf32>
    %190 = vector.shape_cast %189 : vector<16xf32> to vector<16x1xf32>
    %191 = vector.broadcast %190 : vector<16x1xf32> to vector<16x16xf32>
    %192 = arith.divf %188, %191 : vector<16x16xf32>
    %cst_91 = arith.constant dense<0.000000e+00> : vector<16x8xf32>
    %193 = tpu.matmul %192, %178, %cst_91 {dimension_numbers = #tpu.dot_dimension_numbers<[1], [0], [0], [1], [0, 0, 1, 1], [], []>} : vector<16x16xf32>, vector<16x8xf32>, vector<16x8xf32> -> vector<16x8xf32>
    %c0_92 = arith.constant 0 : index
    %c8_93 = arith.constant 8 : index
    %194 = vector.load %arg36[%c0_92, %c8_93] : memref<32x32xf32, #tpu.memory_space<vmem>>, vector<16x8xf32>
    tpu.vector_store %arg36[%c0_92, %c8_93], %193 {strides = array<i32>} : memref<32x32xf32, #tpu.memory_space<vmem>>, vector<16x8xf32>,
    %195 = vector.extract_strided_slice %154 {offsets = [0, 16], sizes = [16, 8], strides = [1, 1]} : vector<32x96xf32> to vector<16x8xf32>
    %196 = vector.extract_strided_slice %154 {offsets = [0, 48], sizes = [16, 8], strides = [1, 1]} : vector<32x96xf32> to vector<16x8xf32>
    %197 = vector.extract_strided_slice %154 {offsets = [0, 80], sizes = [16, 8], strides = [1, 1]} : vector<32x96xf32> to vector<16x8xf32>
    %cst_94 = arith.constant dense<0.000000e+00> : vector<16x16xf32>
    %198 = tpu.matmul %195, %196, %cst_94 {dimension_numbers = #tpu.dot_dimension_numbers<[1], [1], [0], [0], [0, 0, 1, 0], [], []>} : vector<16x8xf32>, vector<16x8xf32>, vector<16x16xf32> -> vector<16x16xf32>
    %cst_95 = arith.constant 0.353553385 : f32
    %199 = vector.broadcast %cst_95 : f32 to vector<16x16xf32>
    %200 = arith.mulf %198, %199 : vector<16x16xf32>
    %201 = vector.broadcast %156 : vector<1x16xf32> to vector<16x16xf32>
    %202 = arith.addf %200, %201 : vector<16x16xf32>
    %cst_96 = arith.constant dense<0xFF800000> : vector<16xf32>
    %203 = vector.multi_reduction <maximumf>, %202, %cst_96 [1] : vector<16x16xf32> to vector<16xf32>
    %204 = vector.shape_cast %203 : vector<16xf32> to vector<16x1xf32>
    %205 = vector.broadcast %204 : vector<16x1xf32> to vector<16x16xf32>
    %206 = arith.subf %202, %205 : vector<16x16xf32>
    %207 = math.exp %206 : vector<16x16xf32>
    %cst_97 = arith.constant dense<0.000000e+00> : vector<16xf32>
    %208 = vector.multi_reduction <add>, %207, %cst_97 [1] : vector<16x16xf32> to vector<16xf32>
    %209 = vector.shape_cast %208 : vector<16xf32> to vector<16x1xf32>
    %210 = vector.broadcast %209 : vector<16x1xf32> to vector<16x16xf32>
    %211 = arith.divf %207, %210 : vector<16x16xf32>
    %cst_98 = arith.constant dense<0.000000e+00> : vector<16x8xf32>
    %212 = tpu.matmul %211, %197, %cst_98 {dimension_numbers = #tpu.dot_dimension_numbers<[1], [0], [0], [1], [0, 0, 1, 1], [], []>} : vector<16x16xf32>, vector<16x8xf32>, vector<16x8xf32> -> vector<16x8xf32>
    %c0_99 = arith.constant 0 : index
    %c16_100 = arith.constant 16 : index
    %213 = vector.load %arg36[%c0_99, %c16_100] : memref<32x32xf32, #tpu.memory_space<vmem>>, vector<16x8xf32>
    tpu.vector_store %arg36[%c0_99, %c16_100], %212 {strides = array<i32>} : memref<32x32xf32, #tpu.memory_space<vmem>>, vector<16x8xf32>,
    %214 = vector.extract_strided_slice %154 {offsets = [0, 24], sizes = [16, 8], strides = [1, 1]} : vector<32x96xf32> to vector<16x8xf32>
    %215 = vector.extract_strided_slice %154 {offsets = [0, 56], sizes = [16, 8], strides = [1, 1]} : vector<32x96xf32> to vector<16x8xf32>
    %216 = vector.extract_strided_slice %154 {offsets = [0, 88], sizes = [16, 8], strides = [1, 1]} : vector<32x96xf32> to vector<16x8xf32>
    %cst_101 = arith.constant dense<0.000000e+00> : vector<16x16xf32>
    %217 = tpu.matmul %214, %215, %cst_101 {dimension_numbers = #tpu.dot_dimension_numbers<[1], [1], [0], [0], [0, 0, 1, 0], [], []>} : vector<16x8xf32>, vector<16x8xf32>, vector<16x16xf32> -> vector<16x16xf32>
    %cst_102 = arith.constant 0.353553385 : f32
    %218 = vector.broadcast %cst_102 : f32 to vector<16x16xf32>
    %219 = arith.mulf %217, %218 : vector<16x16xf32>
    %220 = vector.broadcast %156 : vector<1x16xf32> to vector<16x16xf32>
    %221 = arith.addf %219, %220 : vector<16x16xf32>
    %cst_103 = arith.constant dense<0xFF800000> : vector<16xf32>
    %222 = vector.multi_reduction <maximumf>, %221, %cst_103 [1] : vector<16x16xf32> to vector<16xf32>
    %223 = vector.shape_cast %222 : vector<16xf32> to vector<16x1xf32>
    %224 = vector.broadcast %223 : vector<16x1xf32> to vector<16x16xf32>
    %225 = arith.subf %221, %224 : vector<16x16xf32>
    %226 = math.exp %225 : vector<16x16xf32>
    %cst_104 = arith.constant dense<0.000000e+00> : vector<16xf32>
    %227 = vector.multi_reduction <add>, %226, %cst_104 [1] : vector<16x16xf32> to vector<16xf32>
    %228 = vector.shape_cast %227 : vector<16xf32> to vector<16x1xf32>
    %229 = vector.broadcast %228 : vector<16x1xf32> to vector<16x16xf32>
    %230 = arith.divf %226, %229 : vector<16x16xf32>
    %cst_105 = arith.constant dense<0.000000e+00> : vector<16x8xf32>
    %231 = tpu.matmul %230, %216, %cst_105 {dimension_numbers = #tpu.dot_dimension_numbers<[1], [0], [0], [1], [0, 0, 1, 1], [], []>} : vector<16x16xf32>, vector<16x8xf32>, vector<16x8xf32> -> vector<16x8xf32>
    %c0_106 = arith.constant 0 : index
    %c24_107 = arith.constant 24 : index
    %232 = vector.load %arg36[%c0_106, %c24_107] : memref<32x32xf32, #tpu.memory_space<vmem>>, vector<16x8xf32>
    tpu.vector_store %arg36[%c0_106, %c24_107], %231 {strides = array<i32>} : memref<32x32xf32, #tpu.memory_space<vmem>>, vector<16x8xf32>,
    %233 = vector.extract_strided_slice %155 {offsets = [1, 0], sizes = [1, 16], strides = [1, 1]} : vector<2x16xf32> to vector<1x16xf32>
    %234 = vector.extract_strided_slice %154 {offsets = [16, 0], sizes = [16, 8], strides = [1, 1]} : vector<32x96xf32> to vector<16x8xf32>
    %235 = vector.extract_strided_slice %154 {offsets = [16, 32], sizes = [16, 8], strides = [1, 1]} : vector<32x96xf32> to vector<16x8xf32>
    %236 = vector.extract_strided_slice %154 {offsets = [16, 64], sizes = [16, 8], strides = [1, 1]} : vector<32x96xf32> to vector<16x8xf32>
    %cst_108 = arith.constant dense<0.000000e+00> : vector<16x16xf32>
    %237 = tpu.matmul %234, %235, %cst_108 {dimension_numbers = #tpu.dot_dimension_numbers<[1], [1], [0], [0], [0, 0, 1, 0], [], []>} : vector<16x8xf32>, vector<16x8xf32>, vector<16x16xf32> -> vector<16x16xf32>
    %cst_109 = arith.constant 0.353553385 : f32
    %238 = vector.broadcast %cst_109 : f32 to vector<16x16xf32>
    %239 = arith.mulf %237, %238 : vector<16x16xf32>
    %240 = vector.broadcast %233 : vector<1x16xf32> to vector<16x16xf32>
    %241 = arith.addf %239, %240 : vector<16x16xf32>
    %cst_110 = arith.constant dense<0xFF800000> : vector<16xf32>
    %242 = vector.multi_reduction <maximumf>, %241, %cst_110 [1] : vector<16x16xf32> to vector<16xf32>
    %243 = vector.shape_cast %242 : vector<16xf32> to vector<16x1xf32>
    %244 = vector.broadcast %243 : vector<16x1xf32> to vector<16x16xf32>
    %245 = arith.subf %241, %244 : vector<16x16xf32>
    %246 = math.exp %245 : vector<16x16xf32>
    %cst_111 = arith.constant dense<0.000000e+00> : vector<16xf32>
    %247 = vector.multi_reduction <add>, %246, %cst_111 [1] : vector<16x16xf32> to vector<16xf32>
    %248 = vector.shape_cast %247 : vector<16xf32> to vector<16x1xf32>
    %249 = vector.broadcast %248 : vector<16x1xf32> to vector<16x16xf32>
    %250 = arith.divf %246, %249 : vector<16x16xf32>
    %cst_112 = arith.constant dense<0.000000e+00> : vector<16x8xf32>
    %251 = tpu.matmul %250, %236, %cst_112 {dimension_numbers = #tpu.dot_dimension_numbers<[1], [0], [0], [1], [0, 0, 1, 1], [], []>} : vector<16x16xf32>, vector<16x8xf32>, vector<16x8xf32> -> vector<16x8xf32>
    %c16_113 = arith.constant 16 : index
    %c0_114 = arith.constant 0 : index
    %252 = vector.load %arg36[%c16_113, %c0_114] : memref<32x32xf32, #tpu.memory_space<vmem>>, vector<16x8xf32>
    tpu.vector_store %arg36[%c16_113, %c0_114], %251 {strides = array<i32>} : memref<32x32xf32, #tpu.memory_space<vmem>>, vector<16x8xf32>,
    %253 = vector.extract_strided_slice %154 {offsets = [16, 8], sizes = [16, 8], strides = [1, 1]} : vector<32x96xf32> to vector<16x8xf32>
    %254 = vector.extract_strided_slice %154 {offsets = [16, 40], sizes = [16, 8], strides = [1, 1]} : vector<32x96xf32> to vector<16x8xf32>
    %255 = vector.extract_strided_slice %154 {offsets = [16, 72], sizes = [16, 8], strides = [1, 1]} : vector<32x96xf32> to vector<16x8xf32>
    %cst_115 = arith.constant dense<0.000000e+00> : vector<16x16xf32>
    %256 = tpu.matmul %253, %254, %cst_115 {dimension_numbers = #tpu.dot_dimension_numbers<[1], [1], [0], [0], [0, 0, 1, 0], [], []>} : vector<16x8xf32>, vector<16x8xf32>, vector<16x16xf32> -> vector<16x16xf32>
    %cst_116 = arith.constant 0.353553385 : f32
    %257 = vector.broadcast %cst_116 : f32 to vector<16x16xf32>
    %258 = arith.mulf %256, %257 : vector<16x16xf32>
    %259 = vector.broadcast %233 : vector<1x16xf32> to vector<16x16xf32>
    %260 = arith.addf %258, %259 : vector<16x16xf32>
    %cst_117 = arith.constant dense<0xFF800000> : vector<16xf32>
    %261 = vector.multi_reduction <maximumf>, %260, %cst_117 [1] : vector<16x16xf32> to vector<16xf32>
    %262 = vector.shape_cast %261 : vector<16xf32> to vector<16x1xf32>
    %263 = vector.broadcast %262 : vector<16x1xf32> to vector<16x16xf32>
    %264 = arith.subf %260, %263 : vector<16x16xf32>
    %265 = math.exp %264 : vector<16x16xf32>
    %cst_118 = arith.constant dense<0.000000e+00> : vector<16xf32>
    %266 = vector.multi_reduction <add>, %265, %cst_118 [1] : vector<16x16xf32> to vector<16xf32>
    %267 = vector.shape_cast %266 : vector<16xf32> to vector<16x1xf32>
    %268 = vector.broadcast %267 : vector<16x1xf32> to vector<16x16xf32>
    %269 = arith.divf %265, %268 : vector<16x16xf32>
    %cst_119 = arith.constant dense<0.000000e+00> : vector<16x8xf32>
    %270 = tpu.matmul %269, %255, %cst_119 {dimension_numbers = #tpu.dot_dimension_numbers<[1], [0], [0], [1], [0, 0, 1, 1], [], []>} : vector<16x16xf32>, vector<16x8xf32>, vector<16x8xf32> -> vector<16x8xf32>
    %c16_120 = arith.constant 16 : index
    %c8_121 = arith.constant 8 : index
    %271 = vector.load %arg36[%c16_120, %c8_121] : memref<32x32xf32, #tpu.memory_space<vmem>>, vector<16x8xf32>
    tpu.vector_store %arg36[%c16_120, %c8_121], %270 {strides = array<i32>} : memref<32x32xf32, #tpu.memory_space<vmem>>, vector<16x8xf32>,
    %272 = vector.extract_strided_slice %154 {offsets = [16, 16], sizes = [16, 8], strides = [1, 1]} : vector<32x96xf32> to vector<16x8xf32>
    %273 = vector.extract_strided_slice %154 {offsets = [16, 48], sizes = [16, 8], strides = [1, 1]} : vector<32x96xf32> to vector<16x8xf32>
    %274 = vector.extract_strided_slice %154 {offsets = [16, 80], sizes = [16, 8], strides = [1, 1]} : vector<32x96xf32> to vector<16x8xf32>
    %cst_122 = arith.constant dense<0.000000e+00> : vector<16x16xf32>
    %275 = tpu.matmul %272, %273, %cst_122 {dimension_numbers = #tpu.dot_dimension_numbers<[1], [1], [0], [0], [0, 0, 1, 0], [], []>} : vector<16x8xf32>, vector<16x8xf32>, vector<16x16xf32> -> vector<16x16xf32>
    %cst_123 = arith.constant 0.353553385 : f32
    %276 = vector.broadcast %cst_123 : f32 to vector<16x16xf32>
    %277 = arith.mulf %275, %276 : vector<16x16xf32>
    %278 = vector.broadcast %233 : vector<1x16xf32> to vector<16x16xf32>
    %279 = arith.addf %277, %278 : vector<16x16xf32>
    %cst_124 = arith.constant dense<0xFF800000> : vector<16xf32>
    %280 = vector.multi_reduction <maximumf>, %279, %cst_124 [1] : vector<16x16xf32> to vector<16xf32>
    %281 = vector.shape_cast %280 : vector<16xf32> to vector<16x1xf32>
    %282 = vector.broadcast %281 : vector<16x1xf32> to vector<16x16xf32>
    %283 = arith.subf %279, %282 : vector<16x16xf32>
    %284 = math.exp %283 : vector<16x16xf32>
    %cst_125 = arith.constant dense<0.000000e+00> : vector<16xf32>
    %285 = vector.multi_reduction <add>, %284, %cst_125 [1] : vector<16x16xf32> to vector<16xf32>
    %286 = vector.shape_cast %285 : vector<16xf32> to vector<16x1xf32>
    %287 = vector.broadcast %286 : vector<16x1xf32> to vector<16x16xf32>
    %288 = arith.divf %284, %287 : vector<16x16xf32>
    %cst_126 = arith.constant dense<0.000000e+00> : vector<16x8xf32>
    %289 = tpu.matmul %288, %274, %cst_126 {dimension_numbers = #tpu.dot_dimension_numbers<[1], [0], [0], [1], [0, 0, 1, 1], [], []>} : vector<16x16xf32>, vector<16x8xf32>, vector<16x8xf32> -> vector<16x8xf32>
    %c16_127 = arith.constant 16 : index
    %c16_128 = arith.constant 16 : index
    %290 = vector.load %arg36[%c16_127, %c16_128] : memref<32x32xf32, #tpu.memory_space<vmem>>, vector<16x8xf32>
    tpu.vector_store %arg36[%c16_127, %c16_128], %289 {strides = array<i32>} : memref<32x32xf32, #tpu.memory_space<vmem>>, vector<16x8xf32>,
    %291 = vector.extract_strided_slice %154 {offsets = [16, 24], sizes = [16, 8], strides = [1, 1]} : vector<32x96xf32> to vector<16x8xf32>
    %292 = vector.extract_strided_slice %154 {offsets = [16, 56], sizes = [16, 8], strides = [1, 1]} : vector<32x96xf32> to vector<16x8xf32>
    %293 = vector.extract_strided_slice %154 {offsets = [16, 88], sizes = [16, 8], strides = [1, 1]} : vector<32x96xf32> to vector<16x8xf32>
    %cst_129 = arith.constant dense<0.000000e+00> : vector<16x16xf32>
    %294 = tpu.matmul %291, %292, %cst_129 {dimension_numbers = #tpu.dot_dimension_numbers<[1], [1], [0], [0], [0, 0, 1, 0], [], []>} : vector<16x8xf32>, vector<16x8xf32>, vector<16x16xf32> -> vector<16x16xf32>
    %cst_130 = arith.constant 0.353553385 : f32
    %295 = vector.broadcast %cst_130 : f32 to vector<16x16xf32>
    %296 = arith.mulf %294, %295 : vector<16x16xf32>
    %297 = vector.broadcast %233 : vector<1x16xf32> to vector<16x16xf32>
    %298 = arith.addf %296, %297 : vector<16x16xf32>
    %cst_131 = arith.constant dense<0xFF800000> : vector<16xf32>
    %299 = vector.multi_reduction <maximumf>, %298, %cst_131 [1] : vector<16x16xf32> to vector<16xf32>
    %300 = vector.shape_cast %299 : vector<16xf32> to vector<16x1xf32>
    %301 = vector.broadcast %300 : vector<16x1xf32> to vector<16x16xf32>
    %302 = arith.subf %298, %301 : vector<16x16xf32>
    %303 = math.exp %302 : vector<16x16xf32>
    %cst_132 = arith.constant dense<0.000000e+00> : vector<16xf32>
    %304 = vector.multi_reduction <add>, %303, %cst_132 [1] : vector<16x16xf32> to vector<16xf32>
    %305 = vector.shape_cast %304 : vector<16xf32> to vector<16x1xf32>
    %306 = vector.broadcast %305 : vector<16x1xf32> to vector<16x16xf32>
    %307 = arith.divf %303, %306 : vector<16x16xf32>
    %cst_133 = arith.constant dense<0.000000e+00> : vector<16x8xf32>
    %308 = tpu.matmul %307, %293, %cst_133 {dimension_numbers = #tpu.dot_dimension_numbers<[1], [0], [0], [1], [0, 0, 1, 1], [], []>} : vector<16x16xf32>, vector<16x8xf32>, vector<16x8xf32> -> vector<16x8xf32>
    %c16_134 = arith.constant 16 : index
    %c24_135 = arith.constant 24 : index
    %309 = vector.load %arg36[%c16_134, %c24_135] : memref<32x32xf32, #tpu.memory_space<vmem>>, vector<16x8xf32>
    tpu.vector_store %arg36[%c16_134, %c24_135], %308 {strides = array<i32>} : memref<32x32xf32, #tpu.memory_space<vmem>>, vector<16x8xf32>,
    %c0_136 = arith.constant 0 : index
    %c0_137 = arith.constant 0 : index
    %310 = vector.load %arg36[%c0_136, %c0_137] : memref<32x32xf32, #tpu.memory_space<vmem>>, vector<32x32xf32>
    %c0_138 = arith.constant 0 : index
    %c0_139 = arith.constant 0 : index
    %311 = vector.load %arg22[%c0_138, %c0_139] : memref<32x32xf32, #tpu.memory_space<vmem>>, vector<32x32xf32>
    %cst_140 = arith.constant dense<0.000000e+00> : vector<32x32xf32>
    %312 = tpu.matmul %310, %311, %cst_140 {dimension_numbers = #tpu.dot_dimension_numbers<[1], [0], [0], [1], [0, 0, 1, 1], [], []>} : vector<32x32xf32>, vector<32x32xf32>, vector<32x32xf32> -> vector<32x32xf32>
    %c0_141 = arith.constant 0 : index
    %c0_142 = arith.constant 0 : index
    %313 = vector.load %arg23[%c0_141, %c0_142] : memref<1x32xf32, #tpu.memory_space<vmem>>, vector<1x32xf32>
    %314 = vector.broadcast %313 : vector<1x32xf32> to vector<32x32xf32>
    %315 = arith.addf %312, %314 : vector<32x32xf32>
    %316 = arith.addf %315, %149 : vector<32x32xf32>
    %cst_143 = arith.constant dense<0.000000e+00> : vector<32xf32>
    %317 = vector.multi_reduction <add>, %316, %cst_143 [1] : vector<32x32xf32> to vector<32xf32>
    %318 = vector.shape_cast %317 : vector<32xf32> to vector<32x1xf32>
    %cst_144 = arith.constant 3.200000e+01 : f32
    %319 = vector.broadcast %cst_144 : f32 to vector<32x1xf32>
    %320 = arith.divf %318, %319 : vector<32x1xf32>
    %321 = vector.broadcast %320 : vector<32x1xf32> to vector<32x32xf32>
    %322 = arith.subf %316, %321 : vector<32x32xf32>
    %323 = arith.mulf %322, %322 : vector<32x32xf32>
    %cst_145 = arith.constant dense<0.000000e+00> : vector<32xf32>
    %324 = vector.multi_reduction <add>, %323, %cst_145 [1] : vector<32x32xf32> to vector<32xf32>
    %325 = vector.shape_cast %324 : vector<32xf32> to vector<32x1xf32>
    %cst_146 = arith.constant 3.200000e+01 : f32
    %326 = vector.broadcast %cst_146 : f32 to vector<32x1xf32>
    %327 = arith.divf %325, %326 : vector<32x1xf32>
    %328 = vector.broadcast %320 : vector<32x1xf32> to vector<32x32xf32>
    %329 = arith.subf %316, %328 : vector<32x32xf32>
    %cst_147 = arith.constant 9.99999996E-13 : f32
    %330 = vector.broadcast %cst_147 : f32 to vector<32x1xf32>
    %331 = arith.addf %327, %330 : vector<32x1xf32>
    %332 = math.rsqrt %331 : vector<32x1xf32>
    %333 = vector.broadcast %332 : vector<32x1xf32> to vector<32x32xf32>
    %334 = arith.mulf %329, %333 : vector<32x32xf32>
    %c0_148 = arith.constant 0 : index
    %c0_149 = arith.constant 0 : index
    %335 = vector.load %arg24[%c0_148, %c0_149] : memref<1x32xf32, #tpu.memory_space<vmem>>, vector<1x32xf32>
    %336 = vector.broadcast %335 : vector<1x32xf32> to vector<32x32xf32>
    %337 = arith.mulf %334, %336 : vector<32x32xf32>
    %c0_150 = arith.constant 0 : index
    %c0_151 = arith.constant 0 : index
    %338 = vector.load %arg25[%c0_150, %c0_151] : memref<1x32xf32, #tpu.memory_space<vmem>>, vector<1x32xf32>
    %339 = vector.broadcast %338 : vector<1x32xf32> to vector<32x32xf32>
    %340 = arith.addf %337, %339 : vector<32x32xf32>
    %c0_152 = arith.constant 0 : index
    %c0_153 = arith.constant 0 : index
    %341 = vector.load %arg26[%c0_152, %c0_153] : memref<32x64xf32, #tpu.memory_space<vmem>>, vector<32x64xf32>
    %cst_154 = arith.constant dense<0.000000e+00> : vector<32x64xf32>
    %342 = tpu.matmul %340, %341, %cst_154 {dimension_numbers = #tpu.dot_dimension_numbers<[1], [0], [0], [1], [0, 0, 1, 1], [], []>} : vector<32x32xf32>, vector<32x64xf32>, vector<32x64xf32> -> vector<32x64xf32>
    %c0_155 = arith.constant 0 : index
    %c0_156 = arith.constant 0 : index
    %343 = vector.load %arg27[%c0_155, %c0_156] : memref<1x64xf32, #tpu.memory_space<vmem>>, vector<1x64xf32>
    %344 = vector.broadcast %343 : vector<1x64xf32> to vector<32x64xf32>
    %345 = arith.addf %342, %344 : vector<32x64xf32>
    %cst_157 = arith.constant 5.000000e-01 : f32
    %346 = vector.broadcast %cst_157 : f32 to vector<32x64xf32>
    %347 = arith.mulf %346, %345 : vector<32x64xf32>
    %cst_158 = arith.constant 0.707106769 : f32
    %348 = vector.broadcast %cst_158 : f32 to vector<32x64xf32>
    %349 = arith.mulf %345, %348 : vector<32x64xf32>
    %350 = math.erf %349 : vector<32x64xf32>
    %cst_159 = arith.constant 1.000000e+00 : f32
    %351 = vector.broadcast %cst_159 : f32 to vector<32x64xf32>
    %352 = arith.addf %351, %350 : vector<32x64xf32>
    %353 = arith.mulf %347, %352 : vector<32x64xf32>
    %c0_160 = arith.constant 0 : index
    %c0_161 = arith.constant 0 : index
    %354 = vector.load %arg28[%c0_160, %c0_161] : memref<64x32xf32, #tpu.memory_space<vmem>>, vector<64x32xf32>
    %cst_162 = arith.constant dense<0.000000e+00> : vector<32x32xf32>
    %355 = tpu.matmul %353, %354, %cst_162 {dimension_numbers = #tpu.dot_dimension_numbers<[1], [0], [0], [1], [0, 0, 1, 1], [], []>} : vector<32x64xf32>, vector<64x32xf32>, vector<32x32xf32> -> vector<32x32xf32>
    %c0_163 = arith.constant 0 : index
    %c0_164 = arith.constant 0 : index
    %356 = vector.load %arg29[%c0_163, %c0_164] : memref<1x32xf32, #tpu.memory_space<vmem>>, vector<1x32xf32>
    %357 = vector.broadcast %356 : vector<1x32xf32> to vector<32x32xf32>
    %358 = arith.addf %355, %357 : vector<32x32xf32>
    %359 = arith.addf %358, %340 : vector<32x32xf32>
    %cst_165 = arith.constant dense<0.000000e+00> : vector<32xf32>
    %360 = vector.multi_reduction <add>, %359, %cst_165 [1] : vector<32x32xf32> to vector<32xf32>
    %361 = vector.shape_cast %360 : vector<32xf32> to vector<32x1xf32>
    %cst_166 = arith.constant 3.200000e+01 : f32
    %362 = vector.broadcast %cst_166 : f32 to vector<32x1xf32>
    %363 = arith.divf %361, %362 : vector<32x1xf32>
    %364 = vector.broadcast %363 : vector<32x1xf32> to vector<32x32xf32>
    %365 = arith.subf %359, %364 : vector<32x32xf32>
    %366 = arith.mulf %365, %365 : vector<32x32xf32>
    %cst_167 = arith.constant dense<0.000000e+00> : vector<32xf32>
    %367 = vector.multi_reduction <add>, %366, %cst_167 [1] : vector<32x32xf32> to vector<32xf32>
    %368 = vector.shape_cast %367 : vector<32xf32> to vector<32x1xf32>
    %cst_168 = arith.constant 3.200000e+01 : f32
    %369 = vector.broadcast %cst_168 : f32 to vector<32x1xf32>
    %370 = arith.divf %368, %369 : vector<32x1xf32>
    %371 = vector.broadcast %363 : vector<32x1xf32> to vector<32x32xf32>
    %372 = arith.subf %359, %371 : vector<32x32xf32>
    %cst_169 = arith.constant 9.99999996E-13 : f32
    %373 = vector.broadcast %cst_169 : f32 to vector<32x1xf32>
    %374 = arith.addf %370, %373 : vector<32x1xf32>
    %375 = math.rsqrt %374 : vector<32x1xf32>
    %376 = vector.broadcast %375 : vector<32x1xf32> to vector<32x32xf32>
    %377 = arith.mulf %372, %376 : vector<32x32xf32>
    %c0_170 = arith.constant 0 : index
    %c0_171 = arith.constant 0 : index
    %378 = vector.load %arg30[%c0_170, %c0_171] : memref<1x32xf32, #tpu.memory_space<vmem>>, vector<1x32xf32>
    %379 = vector.broadcast %378 : vector<1x32xf32> to vector<32x32xf32>
    %380 = arith.mulf %377, %379 : vector<32x32xf32>
    %c0_172 = arith.constant 0 : index
    %c0_173 = arith.constant 0 : index
    %381 = vector.load %arg31[%c0_172, %c0_173] : memref<1x32xf32, #tpu.memory_space<vmem>>, vector<1x32xf32>
    %382 = vector.broadcast %381 : vector<1x32xf32> to vector<32x32xf32>
    %383 = arith.addf %380, %382 : vector<32x32xf32>
    %c0_174 = arith.constant 0 : index
    %c0_175 = arith.constant 0 : index
    %384 = vector.load %arg32[%c0_174, %c0_175] : memref<32x32xf32, #tpu.memory_space<vmem>>, vector<32x32xf32>
    %cst_176 = arith.constant dense<0.000000e+00> : vector<32x32xf32>
    %385 = tpu.matmul %383, %384, %cst_176 {dimension_numbers = #tpu.dot_dimension_numbers<[1], [0], [0], [1], [0, 0, 1, 1], [], []>} : vector<32x32xf32>, vector<32x32xf32>, vector<32x32xf32> -> vector<32x32xf32>
    %c0_177 = arith.constant 0 : index
    %c0_178 = arith.constant 0 : index
    %386 = vector.load %arg33[%c0_177, %c0_178] : memref<1x32xf32, #tpu.memory_space<vmem>>, vector<1x32xf32>
    %387 = vector.broadcast %386 : vector<1x32xf32> to vector<32x32xf32>
    %388 = arith.addf %385, %387 : vector<32x32xf32>
    %389 = math.tanh %388 : vector<32x32xf32>
    %390 = vector.extract_strided_slice %389 {offsets = [0, 0], sizes = [1, 32], strides = [1, 1]} : vector<32x32xf32> to vector<1x32xf32>
    %c0_179 = arith.constant 0 : index
    %c0_180 = arith.constant 0 : index
    %391 = vector.load %arg34[%c0_179, %c0_180] : memref<2x32xf32, #tpu.memory_space<vmem>>, vector<1x32xf32>
    tpu.vector_store %arg34[%c0_179, %c0_180], %390 {strides = array<i32>} : memref<2x32xf32, #tpu.memory_space<vmem>>, vector<1x32xf32>,
    %392 = vector.extract_strided_slice %389 {offsets = [16, 0], sizes = [1, 32], strides = [1, 1]} : vector<32x32xf32> to vector<1x32xf32>
    %c1 = arith.constant 1 : index
    %c0_181 = arith.constant 0 : index
    %393 = vector.load %arg34[%c1, %c0_181] : memref<2x32xf32, #tpu.memory_space<vmem>>, vector<1x32xf32>
    tpu.vector_store %arg34[%c1, %c0_181], %392 {strides = array<i32>} : memref<2x32xf32, #tpu.memory_space<vmem>>, vector<1x32xf32>,
    return
  }
}

</mosaic_0001>

<bundles_post_ra>
// kernel: forward.1
= control target key start
LH: loop header
LB: loop body
LE: loop exit
PB: predicated region body
PF: predicated region fallthrough
CT: control target
= control target key end

     0   :  { %s3882_s6 = smov 1   ;;  %s3883_s10 = smov 2   ;;  %s4579_s0 = inlined_call_operand.smem [shape: u32[35], index: -1, kind: input, shape index: {}] }
   0x1   :  { %s3940_s5 = sld [smem:[%s4579_s0]]   ;;  %s3884_s14 = smov 3  }
   0x2   :  { %s3945_s9 = sld [smem:[%s4579_s0 + %s3882_s6]]   ;;  %s3885_s18 = smov 4  }
   0x3   :  { %s3950_s13 = sld [smem:[%s4579_s0 + %s3883_s10]]   ;;  %s3886_s22 = smov 5  }
   0x4   :  { %s3955_s17 = sld [smem:[%s4579_s0 + %s3884_s14]]   ;;  %s3887_s26 = smov 6  }
   0x5   :  { %s3960_s21 = sld [smem:[%s4579_s0 + %s3885_s18]]   ;;  %s3888_s30 = smov 7  }
   0x6   :  { %s3965_s25 = sld [smem:[%s4579_s0 + %s3886_s22]]   ;;  %s3889_s4 = smov 8  }
   0x7   :  { %s3970_s29 = sld [smem:[%s4579_s0 + %s3887_s26]]   ;;  %s3890_s10 = smov 9  }
   0x8   :  { %s3975_s3 = sld [smem:[%s4579_s0 + %s3888_s30]]   ;;  %s3891_s15 = smov 10  }
   0x9   :  { %s3980_s8 = sld [smem:[%s4579_s0 + %s3889_s4]]   ;;  %s3892_s20 = smov 11  }
   0xa   :  { %s3985_s14 = sld [smem:[%s4579_s0 + %s3890_s10]]   ;;  %s3893_s26 = smov 12  }
   0xb   :  { %s3990_s19 = sld [smem:[%s4579_s0 + %s3891_s15]]   ;;  %s3894_s1 = smov 13  }
   0xc   :  { %4584 = sst [smem:[#allocation7_spill]] %s3965_s25  ;;  %s3895_s7 = smov 14  }
   0xd   :  { %4585 = sst [smem:[#allocation8_spill]] %s3970_s29  ;;  %s3896_s15 = smov 15  }
   0xe   :  { %4586 = sst [smem:[#allocation9_spill]] %s3975_s3  ;;  %s3897_s22 = smov 16  }
   0xf   :  { %s3995_s24 = sld [smem:[%s4579_s0 + %s3892_s20]]   ;;  %s3898_s28 = smov 17  }
  0x10   :  { %s4000_s30 = sld [smem:[%s4579_s0 + %s3893_s26]]  }
  0x11   :  { %s4005_s6 = sld [smem:[%s4579_s0 + %s3894_s1]]  }
  0x12   :  { %s4010_s12 = sld [smem:[%s4579_s0 + %s3895_s7]]   ;;  %s3899_s7 = smov 18  }
  0x13   :  { %s4015_s20 = sld [smem:[%s4579_s0 + %s3896_s15]]   ;;  %s3900_s15 = smov 19  }
  0x14   :  { %s4020_s27 = sld [smem:[%s4579_s0 + %s3897_s22]]   ;;  %s3901_s22 = smov 20  }
  0x15   :  { %s4025_s4 = sld [smem:[%s4579_s0 + %s3898_s28]]   ;;  %s3902_s28 = smov 21  }
  0x16   :  { %s4030_s25 = sld [smem:[%s4579_s0 + %s3899_s7]]   ;;  %s3903_s7 = smov 22  }
  0x17   :  { %s4035_s3 = sld [smem:[%s4579_s0 + %s3900_s15]]   ;;  %s3904_s15 = smov 23  }
  0x18   :  { %s4040_s29 = sld [smem:[%s4579_s0 + %s3901_s22]]   ;;  %s3905_s22 = smov 24  }
  0x1b   :  { %4587 = sst [smem:[#allocation10_spill]] %s4025_s4 }
  0x1c   :  { %4588 = sst [smem:[#allocation11_spill]] %s4030_s25 }
  0x1d   :  { %4589 = sst [smem:[#allocation12_spill]] %s4035_s3 }
  0x1e   :  { %4590 = sst [smem:[#allocation13_spill]] %s4040_s29 }
  0x1f   :  { %s4045_s4 = sld [smem:[%s4579_s0 + %s3902_s28]]   ;;  %s3906_s28 = smov 25  }
  0x20   :  { %s4050_s25 = sld [smem:[%s4579_s0 + %s3903_s7]]   ;;  %s3907_s7 = smov 26  }
  0x21   :  { %s4055_s3 = sld [smem:[%s4579_s0 + %s3904_s15]]   ;;  %s3908_s15 = smov 27  }
  0x22   :  { %s4060_s29 = sld [smem:[%s4579_s0 + %s3905_s22]]   ;;  %s3909_s22 = smov 28  }
  0x25   :  { %4591 = sst [smem:[#allocation14_spill]] %s4045_s4 }
  0x26   :  { %4592 = sst [smem:[#allocation15_spill]] %s4050_s25 }
  0x27   :  { %4593 = sst [smem:[#allocation16_spill]] %s4055_s3 }
  0x28   :  { %4594 = sst [smem:[#allocation17_spill]] %s4060_s29 }
  0x29   :  { %s4065_s4 = sld [smem:[%s4579_s0 + %s3906_s28]]   ;;  %s3910_s28 = smov 29  }
  0x2a   :  { %s4070_s25 = sld [smem:[%s4579_s0 + %s3907_s7]]   ;;  %s3911_s7 = smov 30  }
  0x2b   :  { %s4075_s3 = sld [smem:[%s4579_s0 + %s3908_s15]]   ;;  %s3912_s15 = smov 31  }
  0x2c   :  { %s4080_s29 = sld [smem:[%s4579_s0 + %s3909_s22]]   ;;  %s3913_s22 = smov 32  }
  0x2f   :  { %4595 = sst [smem:[#allocation18_spill]] %s4065_s4 }
  0x30   :  { %4596 = sst [smem:[#allocation19_spill]] %s4070_s25 }
  0x31   :  { %4597 = sst [smem:[#allocation20_spill]] %s4075_s3 }
  0x32   :  { %4598 = sst [smem:[#allocation21_spill]] %s4080_s29 }
  0x33   :  { %s4085_s4 = sld [smem:[%s4579_s0 + %s3910_s28]]   ;;  %s3914_s28 = smov 33  }
  0x34   :  { %s4090_s25 = sld [smem:[%s4579_s0 + %s3911_s7]]   ;;  %s3915_s7 = smov 34  }
  0x35   :  { %s4095_s3 = sld [smem:[%s4579_s0 + %s3912_s15]]  }
  0x36   :  { %s4100_s29 = sld [smem:[%s4579_s0 + %s3913_s22]]  }
  0x39   :  { %4599 = sst [smem:[#allocation22_spill]] %s4085_s4 }
  0x3a   :  { %4600 = sst [smem:[#allocation23_spill]] %s4090_s25 }
  0x3b   :  { %s4105_s4 = sld [smem:[%s4579_s0 + %s3914_s28]]  }
  0x3c   :  { %s4110_s25 = sld [smem:[%s4579_s0 + %s3915_s7]]  }
  0x3d   :  { %v193_v0 = vld [vmem:[%s3980_s8] sm:$0xff]  ;;  %v194_v1 = vld [vmem:[%s3980_s8 + $0x8] sm:$0xff]  ;;  %vm202_vm0 = vcmask 130048   ;;  %vm355_vm1 = vcmask 1046528  }
  0x3e   :  { %v191_v2 = vld [vmem:[%s3945_s9] sm:$0xff]  ;;  %v3480_v3 = vpack.c.bf16 %v194_v1, %v193_v0 }
  0x3f   :  { %3282 = vmatprep.mubr.msk.f32.mxu0 %vm202_vm0, %v191_v2  ;;  %v340_v4 = vld [vmem:[%s4000_s30] sm:$0x7f] }
  0x40   :  { %74 = vsyncpa [#allocation5], 0  ;;  %3481 = vmatprep.subr.bf16.mxu0 %v3480_v3  ;;  %v192_v5 = vld [vmem:[%s3945_s9 + $0x8] sm:$0xf]  ;;  %v338_v6 = vld [vmem:[%s3950_s13] sm:$0xff]  ;;  %vm348_vm2 = vcmask 56320  }
  0x41   :  { %3483 = vmatpush3.bf16.msra.mxu0 %v3480_v3  ;;  %v339_v7 = vld [vmem:[%s3950_s13 + $0x8] sm:$0xf]  ;;  %vm145_vm3 = vcmask 261120   ;;  %v480_v8 = vld [vmem:[%s3955_s17] sm:$0xff]  ;;  %v3916_v39 = vmov 0.0   ;;  %vm287_vm4 = vcmask 257024  }
  0x42   :  { %3285 = vmatprep.subr.msk.mxu0 %vm355_vm1, %v340_v4  ;;  %v482_v9 = vsel %vm145_vm3, %v480_v8, 0.0  ;;  %v3070_v10 = vld [vmem:[%s3985_s14] ss:$0 sm:$0xff]  ;;  %572 = vst.msk [vmem:[#allocation2] sm:$0xff] %vm145_vm3, %v3916_v39  ;;  %573 = vst.msk [vmem:[#allocation2 + $0x8] sm:$0xff] %vm145_vm3, %v3916_v39  ;;  %s4601_s0 = sld [smem:[#allocation10_spill]] }
  0x43   :  { %483 = vadd.xlane.f32.xlu1 %v482_v9  ;;  %v3076_v15 = vld [vmem:[%s4005_s6] ss:$0 sm:$0xff]  ;;  %574 = vst.msk [vmem:[#allocation2 + $0x10] sm:$0xff] %vm145_vm3, %v3916_v39  ;;  %575 = vst.msk [vmem:[#allocation2 + $0x18] sm:$0xff] %vm145_vm3, %v3916_v39  ;;  %v481_v59 = vld [vmem:[%s3955_s17 + $0x8] sm:$0xf] }
  0x44   :  { %3283 = vmatmul.mubr.msk.f32.vlgmr.msra.gmra.mrb[0].mxu0 %vm202_vm0, %v192_v5  ;;  %v143_v36 = vld [vmem:[%s3940_s5] sm:$0xff]  ;;  %s4602_s9 = sld [smem:[#allocation8_spill]]  ;;  %s4603_s13 = sld [smem:[#allocation9_spill]]  ;;  %vm577_vm5 = vcmask 259072   ;;  %vm580_vm6 = vcmask 261126   ;;  %vm702_vm7 = vcmask 64512  }
  0x45   :  { %3286 = vmatpush3.msk.msra.mxu0 %vm355_vm1, %v340_v4  ;;  %3287 = vmatprep.mubr.msk.f32.mxu0 %vm348_vm2, %v338_v6  ;;  %v146_v38 = vsel %vm145_vm3, %v143_v36, 0.0  ;;  %v4142_v55 = vld [vmem:[%s3990_s19] ss:$0 sm:$0xff]  ;;  %v485_v4 = vsel %vm287_vm4, %v481_v59, 0.0  ;;  %s4604_s17 = sld [smem:[#allocation13_spill]]  ;;  %s4606_s8 = sld [smem:[#allocation12_spill]]  ;;  %vm4262_vm8 = vmpackc.low %vm702_vm7, %vm702_vm7 }
  0x46   :  { %v4146_v58 = vld [vmem:[%s3995_s24] ss:$0 sm:$0xff]  ;;  %s3917_s14 = smov 96   ;;  %s3918_s19 = smov 120   ;;  %vm1117_vm9 = vcmask 130112   ;;  %vm1332_vm10 = vcmask 195712  }
  0x47   :  { %v4152_v63 = vld [vmem:[%s4010_s12] ss:$0 sm:$0xff]  ;;  %s3919_s24 = smov 112   ;;  %s3920_s30 = smov 88   ;;  %vm1547_vm11 = vcmask 261312   ;;  %vm2733_vm12 = vcmask 523264  }
  0x48   :  { %3288 = vmatmul.mubr.msk.f32.vlgmr.msra.gmra.mrb[2].mxu0 %vm348_vm2, %v339_v7  ;;  %v4155_v1 = vld [vmem:[%s4020_s27] ss:$0 sm:$0xff]  ;;  %s3921_s6 = smov 80   ;;  %s4610_s12 = sld [smem:[#allocation7_spill]]  ;;  %vm3017_vm13 = vcmask 253952  }
  0x49   :  { %v4160_v5 = vld [vmem:[%s3960_s21] ss:$0 sm:$0xff]  ;;  %s4605_s21 = sld [smem:[#allocation11_spill]]  ;;  %s3923_s27 = smov 48  }
  0x4a   :  { %v4163_v6 = vld [vmem:[%s4015_s20] ss:$0 sm:$0xff]  ;;  %s3922_s20 = smov 64   ;;  %s3924_s15 = smov 72  }
  0x4b   :  { %v4168_v9 = vld [vmem:[%s4601_s0] ss:$0 sm:$0xff]  ;;  %s3925_s16 = smov 56   ;;  %s3926_s18 = smov 104  }
  0x4c   :  { %s3927_s22 = smov 40   ;;  %s3928_s23 = smov 8  }
  0x4d   :  { %s3929_s26 = smov 16   ;;  %s3930_s28 = smov 24  }
  0x4e   :  { %s4611_s1 = sld [smem:[#allocation15_spill]]  ;;  %s4612_s2 = sld [smem:[#allocation16_spill]] }
  0x4f   :  { %s4613_s7 = sld [smem:[#allocation19_spill]]  ;;  %s4614_s10 = sld [smem:[#allocation17_spill]] }
  0x50   :  { %s4615_s11 = sld [smem:[#allocation18_spill]]  ;;  %s4616_s0 = sld [smem:[#allocation21_spill]] }
  0xd0   :  { %v484_v22 = vpop.xlane.xlu1 %483 }
  0xd1   :  { %v488_v23 = vmul.f32 0.03125, %v484_v22 }
  0xd3   :  { %v490_v26 = vsub.f32 %v480_v8, %v488_v23  ;;  %v4175_v23 = vld [vmem:[%s4602_s9] ss:$0 sm:$0xff]  ;;  %s4617_s9 = sld [smem:[#allocation20_spill]] }
  0xd5   :  { %v492_v31 = vmul.f32 %v490_v26, %v490_v26 }
  0xd7   :  { %v494_v34 = vsel %vm145_vm3, %v492_v31, 0.0 }
 0x117   :  { %v3284_v11 = vpop.f32.mrb[0].mxu0 }
 0x118   :  { %v4124_v12 = vadd.f32 %v3284_v11, %v3070_v10  ;;  %v275_v13 = vpop.f32.mrb[1].mxu0 }
 0x119   :  { %v276_v14 = vadd.f32 %v3070_v10, %v275_v13 }
 0x11a   :  { %v288_v61 = vsel %vm287_vm4, %v4124_v12, 0.0 }
 0x11b   :  { %v3289_v16 = vpop.f32.mrb[2].mxu0  ;;  %v284_v17 = vsel %vm145_vm3, %v276_v14, 0.0 }
 0x11c   :  { %v4128_v18 = vadd.f32 %v3289_v16, %v3076_v15  ;;  %v425_v19 = vpop.f32.mrb[3].mxu0  ;;  %285 = vadd.xlane.f32.xlu0 %v284_v17 }
 0x11d   :  { %v426_v20 = vadd.f32 %v3076_v15, %v425_v19 }
 0x11f   :  { %v434_v21 = vsel %vm145_vm3, %v426_v20, 0.0 }
 0x120   :  { %435 = vadd.xlane.f32.xlu0 %v434_v21 }
 0x1a9   :  { %v286_v24 = vpop.xlane.xlu0 %285 }
 0x1aa   :  { %v291_v25 = vmul.f32 0.03125, %v286_v24 }
 0x1ac   :  { %v293_v27 = vsub.f32 %v276_v14, %v291_v25 }
 0x1ad   :  { %v436_v28 = vpop.xlane.xlu0 %435 }
 0x1ae   :  { %v440_v29 = vmul.f32 0.03125, %v436_v28  ;;  %v295_v30 = vmul.f32 %v293_v27, %v293_v27 }
 0x1b0   :  { %v442_v32 = vsub.f32 %v426_v20, %v440_v29  ;;  %v297_v33 = vsel %vm145_vm3, %v295_v30, 0.0 }
 0x1b1   :  { %298 = vadd.xlane.f32.xlu1 %v297_v33 }
 0x1b2   :  { %v444_v35 = vmul.f32 %v442_v32, %v442_v32 }
 0x1b4   :  { %v446_v37 = vsel %vm145_vm3, %v444_v35, 0.0 }
 0x1b5   :  { %495 = vadd.xlane.f32.xlu1 %v494_v34  ;;  %447 = vadd.xlane.f32.xlu0 %v446_v37 }
 0x1b9   :  { %147 = vadd.xlane.f32.xlu0 %v146_v38  ;;  %v437_v38 = vsel %vm287_vm4, %v4128_v18, 0.0 }
 0x23e   :  { %v299_v40 = vpop.xlane.xlu1 %298 }
 0x23f   :  { %v303_v41 = vmul.f32 0.03125, %v299_v40 }
 0x241   :  { %v305_v42 = vadd.f32 1e-12, %v303_v41 }
 0x242   :  { %v496_v43 = vpop.xlane.xlu1 %495  ;;  %v448_v44 = vpop.xlane.xlu0 %447 }
 0x243   :  { %3742 = vrsqrt.f32 %v305_v42  ;;  %v500_v45 = vmul.f32 0.03125, %v496_v43  ;;  %v452_v46 = vmul.f32 0.03125, %v448_v44  ;;  %v587_v43 = vld [vmem:[%s4604_s17] sm:$0xff]  ;;  %v588_v44 = vld [vmem:[%s4604_s17 + $0x8] sm:$0xff] }
 0x245   :  { %v502_v47 = vadd.f32 1e-12, %v500_v45  ;;  %v454_v48 = vadd.f32 1e-12, %v452_v46  ;;  %v3484_v45 = vpack.c.bf16 %v588_v44, %v587_v43  ;;  %v589_v46 = vld [vmem:[%s4604_s17 + $0x10] sm:$0xff] }
 0x246   :  { %v148_v49 = vpop.xlane.xlu0 %147 }
 0x247   :  { %3744 = vrsqrt.f32 %v502_v47  ;;  %v153_v50 = vmul.f32 0.03125, %v148_v49  ;;  %3485 = vmatprep.subr.bf16.mxu1 %v3484_v45  ;;  %v590_v47 = vld [vmem:[%s4604_s17 + $0x18] sm:$0xff]  ;;  %s4619_s17 = sld [smem:[#allocation23_spill]] }
 0x248   :  { %3746 = vrsqrt.f32 %v454_v48  ;;  %3487 = vmatpush3.bf16.msra.mxu1 %v3484_v45  ;;  %v3488_v48 = vpack.c.bf16 %v590_v47, %v589_v46 }
 0x249   :  { %v155_v51 = vsub.f32 %v143_v36, %v153_v50 }
 0x24a   :  { %3489 = vmatprep.subr.bf16.mxu1 %v3488_v48 }
 0x24b   :  { %v157_v52 = vmul.f32 %v155_v51, %v155_v51 }
 0x24c   :  { %3491 = vmatpush3.bf16.msra.mxu1 %v3488_v48 }
 0x24d   :  { %v3743_v53 = vpop.eup %3742  ;;  %v159_v54 = vsel %vm145_vm3, %v157_v52, 0.0 }
 0x24e   :  { %160 = vadd.xlane.f32.xlu0 %v159_v54  ;;  %v309_v56 = vmul.f32 %v3743_v53, %v293_v27 }
 0x250   :  { %v318_v57 = vmul.f32 %v4142_v55, %v309_v56 }
 0x251   :  { %v3745_v60 = vpop.eup %3744 }
 0x252   :  { %v3747_v62 = vpop.eup %3746  ;;  %289 = vadd.xlane.f32.xlu0 %v288_v61  ;;  %v506_v0 = vmul.f32 %v3745_v60, %v490_v26  ;;  %v327_v2 = vadd.f32 %v4146_v58, %v318_v57  ;;  %v4178_v26 = vld [vmem:[%s4603_s13] ss:$0 sm:$0xff]  ;;  %v144_v57 = vld [vmem:[%s3940_s5 + $0x8] sm:$0xff]  ;;  %s4607_s5 = sld [smem:[#allocation14_spill]] }
 0x253   :  { %v458_v3 = vmul.f32 %v3747_v62, %v442_v32  ;;  %v149_v60 = vsel %vm145_vm3, %v144_v57, 0.0  ;;  %v4207_v62 = vld [vmem:[%s4605_s21] ss:$0 sm:$0xff]  ;;  %s4618_s13 = sld [smem:[#allocation22_spill]] }
 0x254   :  { %v515_v8 = vmul.f32 %v4155_v1, %v506_v0  ;;  %v336_v10 = vadd.f32 %v4160_v5, %v327_v2  ;;  %v4210_v2 = vld [vmem:[%s4606_s8] ss:$0 sm:$0xff] }
 0x255   :  { %v467_v7 = vmul.f32 %v4152_v63, %v458_v3 }
 0x256   :  { %486 = vadd.xlane.f32.xlu0 %v485_v4  ;;  %v524_v14 = vadd.f32 %v4168_v9, %v515_v8 }
 0x257   :  { %v476_v11 = vadd.f32 %v4163_v6, %v467_v7 }
 0x259   :  { %v478_v13 = vadd.f32 %v476_v11, %v336_v10 }
 0x25b   :  { %v526_v15 = vadd.f32 %v524_v14, %v478_v13 }
 0x25d   :  { %v528_v16 = vsel %vm145_vm3, %v526_v15, 0.0 }
 0x25e   :  { %529 = vadd.xlane.f32.xlu1 %v528_v16 }
 0x2db   :  { %v161_v17 = vpop.xlane.xlu0 %160 }
 0x2dc   :  { %v165_v19 = vmul.f32 0.03125, %v161_v17 }
 0x2de   :  { %v167_v20 = vadd.f32 1e-12, %v165_v19 }
 0x2df   :  { %v290_v21 = vpop.xlane.xlu0 %289 }
 0x2e0   :  { %3748 = vrsqrt.f32 %v167_v20  ;;  %v292_v30 = vmul.f32 0.03125, %v290_v21 }
 0x2e2   :  { %v4184_v35 = vsub.f32 %v4124_v12, %v292_v30 }
 0x2e3   :  { %v487_v29 = vpop.xlane.xlu0 %486 }
 0x2e4   :  { %v489_v34 = vmul.f32 0.03125, %v487_v29  ;;  %v296_v39 = vmul.f32 %v4184_v35, %v4184_v35 }
 0x2e6   :  { %v4187_v37 = vsub.f32 %v481_v59, %v489_v34  ;;  %v300_v12 = vsel %vm287_vm4, %v296_v39, 0.0 }
 0x2e8   :  { %v493_v41 = vmul.f32 %v4187_v37, %v4187_v37 }
 0x2ea   :  { %v3749_v22 = vpop.eup %3748  ;;  %v497_v42 = vsel %vm287_vm4, %v493_v41, 0.0 }
 0x2eb   :  { %v171_v24 = vmul.f32 %v3749_v22, %v155_v51  ;;  %v530_v25 = vpop.xlane.xlu1 %529 }
 0x2ec   :  { %v534_v27 = vmul.f32 0.03125, %v530_v25 }
 0x2ed   :  { %v180_v28 = vmul.f32 %v4175_v23, %v171_v24 }
 0x2ee   :  { %v536_v31 = vsub.f32 %v526_v15, %v534_v27 }
 0x2ef   :  { %v189_v32 = vadd.f32 %v4178_v26, %v180_v28 }
 0x2f0   :  { %v538_v33 = vmul.f32 %v536_v31, %v536_v31 }
 0x2f1   :  { %576 = vst.msk [vmem:[#allocation2] sm:$0xff] %vm145_vm3, %v189_v32 }
 0x2f2   :  { %v540_v36 = vsel %vm145_vm3, %v538_v33, 0.0 }
 0x2f3   :  { %541 = vadd.xlane.f32.xlu1 %v540_v36 }
 0x2f7   :  { %438 = vadd.xlane.f32.xlu1 %v437_v38 }
 0x2f8   :  { %v583_v40 = vld [vmem:[#allocation2] sm:$0xff] }
 0x2f9   :  { %3298 = vmatprep.mubr.msk.f32.mxu1 %vm145_vm3, %v583_v40 }
 0x2fb   :  { %301 = vadd.xlane.f32.xlu1 %v300_v12 }
 0x2ff   :  { %498 = vadd.xlane.f32.xlu1 %v497_v42 }
 0x380   :  { %v542_v49 = vpop.xlane.xlu1 %541 }
 0x381   :  { %v546_v50 = vmul.f32 0.03125, %v542_v49 }
 0x383   :  { %v548_v51 = vadd.f32 1e-12, %v546_v50 }
 0x384   :  { %v439_v52 = vpop.xlane.xlu1 %438 }
 0x385   :  { %3750 = vrsqrt.f32 %v548_v51  ;;  %v441_v53 = vmul.f32 0.03125, %v439_v52 }
 0x387   :  { %v443_v54 = vsub.f32 %v4128_v18, %v441_v53 }
 0x388   :  { %v302_v7 = vpop.xlane.xlu1 %301 }
 0x389   :  { %v445_v56 = vmul.f32 %v443_v54, %v443_v54  ;;  %v304_v8 = vmul.f32 0.03125, %v302_v7 }
 0x38b   :  { %v449_v59 = vsel %vm287_vm4, %v445_v56, 0.0  ;;  %v306_v11 = vadd.f32 1e-12, %v304_v8 }
 0x38c   :  { %450 = vadd.xlane.f32.xlu0 %v449_v59  ;;  %v499_v10 = vpop.xlane.xlu1 %498 }
 0x38d   :  { %v501_v13 = vmul.f32 0.03125, %v499_v10  ;;  %3752 = vrsqrt.f32 %v306_v11 }
 0x38f   :  { %v3751_v61 = vpop.eup %3750  ;;  %v503_v14 = vadd.f32 1e-12, %v501_v13 }
 0x390   :  { %v552_v0 = vmul.f32 %v3751_v61, %v536_v31  ;;  %150 = vadd.xlane.f32.xlu0 %v149_v60 }
 0x391   :  { %3754 = vrsqrt.f32 %v503_v14 }
 0x392   :  { %v561_v3 = vmul.f32 %v4207_v62, %v552_v0 }
 0x394   :  { %v570_v18 = vadd.f32 %v4210_v2, %v561_v3 }
 0x396   :  { %578 = vst.msk [vmem:[#allocation2 + $0x8] sm:$0x3f] %vm577_vm5, %v570_v18 }
 0x397   :  { %581 = vst.msk [vmem:[#allocation2 + $0x12] sm:$0xc0] %vm580_vm6, %v570_v18  ;;  %v3753_v20 = vpop.eup %3752 }
 0x398   :  { %v310_v24 = vmul.f32 %v3753_v20, %v4184_v35 }
 0x39a   :  { %v319_v29 = vmul.f32 %v4142_v55, %v310_v24  ;;  %v4292_v24 = vld [vmem:[%s4610_s12] sm:$0x3] }
 0x39b   :  { %v3755_v27 = vpop.eup %3754 }
 0x39c   :  { %v507_v30 = vmul.f32 %v3755_v27, %v4187_v37  ;;  %v328_v32 = vadd.f32 %v4146_v58, %v319_v29  ;;  %v4227_v37 = vld [vmem:[%s4607_s5] ss:$0 sm:$0xff] }
 0x39d   :  { %v584_v4 = vld [vmem:[#allocation2 + $0x8] sm:$0xff] }
 0x39e   :  { %3299 = vmatmul.mubr.msk.f32.vlgmr.msra.gmra.mrb[0].mxu1 %vm145_vm3, %v584_v4  ;;  %v516_v36 = vmul.f32 %v4155_v1, %v507_v30  ;;  %v337_v35 = vadd.f32 %v4160_v5, %v328_v32 }
 0x3a0   :  { %v525_v40 = vadd.f32 %v4168_v9, %v516_v36 }
 0x419   :  { %v451_v15 = vpop.xlane.xlu0 %450 }
 0x41a   :  { %v453_v16 = vmul.f32 0.03125, %v451_v15 }
 0x41c   :  { %v455_v17 = vadd.f32 1e-12, %v453_v16 }
 0x41d   :  { %v151_v19 = vpop.xlane.xlu0 %150 }
 0x41e   :  { %3756 = vrsqrt.f32 %v455_v17  ;;  %v154_v21 = vmul.f32 0.03125, %v151_v19 }
 0x420   :  { %v156_v22 = vsub.f32 %v144_v57, %v154_v21 }
 0x422   :  { %v158_v25 = vmul.f32 %v156_v22, %v156_v22 }
 0x424   :  { %v162_v28 = vsel %vm145_vm3, %v158_v25, 0.0 }
 0x425   :  { %163 = vadd.xlane.f32.xlu0 %v162_v28 }
 0x428   :  { %v3757_v31 = vpop.eup %3756 }
 0x429   :  { %v459_v33 = vmul.f32 %v3757_v31, %v443_v54 }
 0x42b   :  { %v468_v34 = vmul.f32 %v4152_v63, %v459_v33 }
 0x42d   :  { %v477_v38 = vadd.f32 %v4163_v6, %v468_v34 }
 0x42f   :  { %v479_v39 = vadd.f32 %v477_v38, %v337_v35 }
 0x431   :  { %v527_v41 = vadd.f32 %v525_v40, %v479_v39 }
 0x433   :  { %v531_v55 = vsel %vm287_vm4, %v527_v41, 0.0 }
 0x434   :  { %532 = vadd.xlane.f32.xlu1 %v531_v55 }
 0x471   :  { %v3300_v12 = vpop.f32.mrb[0].mxu1 }
 0x472   :  { %v4230_v58 = vadd.f32 %v3300_v12, %v4227_v37  ;;  %v676_v63 = vpop.f32.mrb[1].mxu1 }
 0x473   :  { %v4233_v1 = vadd.f32 %v4227_v37, %v676_v63 }
 0x475   :  { %3308 = vmatprep.mubr.msk.f32.mxu0 %vm702_vm7, %v4233_v1  ;;  %v4239_v5 = vpack.i.bf16 %v4230_v58, %v4233_v1 }
 0x477   :  { %3663 = vrot.lane.b32.xlu0 %v4239_v5, %s3917_s14 }
 0x47b   :  { %907 = vrot.lane.b32.xlu0 %v4230_v58, %s3918_s19 }
 0x47f   :  { %1122 = vrot.lane.b32.xlu0 %v4230_v58, %s3919_s24 }
 0x4b2   :  { %v164_v6 = vpop.xlane.xlu0 %163 }
 0x4b3   :  { %v166_v9 = vmul.f32 0.03125, %v164_v6 }
 0x4b5   :  { %v168_v42 = vadd.f32 1e-12, %v166_v9 }
 0x4b7   :  { %3758 = vrsqrt.f32 %v168_v42 }
 0x4c1   :  { %v3759_v43 = vpop.eup %3758  ;;  %v533_v44 = vpop.xlane.xlu1 %532 }
 0x4c2   :  { %v172_v45 = vmul.f32 %v3759_v43, %v156_v22  ;;  %v535_v46 = vmul.f32 0.03125, %v533_v44 }
 0x4c4   :  { %v181_v47 = vmul.f32 %v4175_v23, %v172_v45  ;;  %v537_v48 = vsub.f32 %v527_v41, %v535_v46 }
 0x4c6   :  { %v190_v49 = vadd.f32 %v4178_v26, %v181_v47  ;;  %v539_v50 = vmul.f32 %v537_v48, %v537_v48 }
 0x4c8   :  { %579 = vst.msk [vmem:[#allocation2 + $0x10] sm:$0xff] %vm145_vm3, %v190_v49  ;;  %v543_v51 = vsel %vm287_vm4, %v539_v50, 0.0 }
 0x4c9   :  { %544 = vadd.xlane.f32.xlu1 %v543_v51 }
 0x4cf   :  { %v585_v52 = vld [vmem:[#allocation2 + $0x10] sm:$0xff] }
 0x4d0   :  { %3301 = vmatprep.mubr.msk.f32.mxu1 %vm145_vm3, %v585_v52 }
 0x4da   :  { %3668 = vrot.lane.b32.xlu1 %v4239_v5, %s3920_s30 }
 0x4de   :  { %905 = vrot.lane.b32.xlu1 %v4233_v1, %s3918_s19 }
 0x4e2   :  { %3673 = vrot.lane.b32.xlu1 %v4239_v5, %s3921_s6 }
 0x4e6   :  { %1120 = vrot.lane.b32.xlu1 %v4233_v1, %s3919_s24 }
 0x4e9   :  { %v3664_v23 = vpop.permute.xlu0 %3663 }
 0x4ea   :  { %v3666_v26 = vunpack.i.h.bf16 %v3664_v23  ;;  %v3665_v53 = vunpack.i.l.bf16 %v3664_v23 }
 0x4ec   :  { %v3492_v56 = vpack.c.bf16 %v3666_v26, %v3665_v53 }
 0x4ed   :  { %v908_v19 = vpop.permute.xlu0 %907 }
 0x4ee   :  { %3494 = vmatprep.subr.msk.bf16.mxu0 %vm4262_vm8, %v3492_v56 }
 0x4ef   :  { %3497 = vmatpush3.bf16.xpose.msk.msra.mxu0 %vm4262_vm8, %v3492_v56 }
 0x4f6   :  { %3309 = vmatmul.mubr.msk.f32.vlgmr.msra.gmra.mrb[4].mxu0 %vm702_vm7, %v4230_v58 }
 0x556   :  { %v545_v57 = vpop.xlane.xlu1 %544 }
 0x557   :  { %v547_v59 = vmul.f32 0.03125, %v545_v57 }
 0x559   :  { %v549_v60 = vadd.f32 1e-12, %v547_v59 }
 0x55a   :  { %v3669_v61 = vpop.permute.xlu1 %3668 }
 0x55b   :  { %3760 = vrsqrt.f32 %v549_v60  ;;  %v3671_v0 = vunpack.i.h.bf16 %v3669_v61  ;;  %v3670_v3 = vunpack.i.l.bf16 %v3669_v61 }
 0x55d   :  { %v3502_v18 = vpack.c.bf16 %v3671_v0, %v3670_v3 }
 0x55e   :  { %v906_v4 = vpop.permute.xlu1 %905 }
 0x55f   :  { %3504 = vmatprep.subr.msk.bf16.mxu1 %vm4262_vm8, %v3502_v18 }
 0x560   :  { %3507 = vmatpush3.bf16.xpose.msk.msra.mxu1 %vm4262_vm8, %v3502_v18 }
 0x562   :  { %v3674_v7 = vpop.permute.xlu1 %3673 }
 0x563   :  { %v3676_v8 = vunpack.i.h.bf16 %v3674_v7  ;;  %v3675_v10 = vunpack.i.l.bf16 %v3674_v7 }
 0x565   :  { %v3761_v11 = vpop.eup %3760  ;;  %v3512_v13 = vpack.c.bf16 %v3676_v8, %v3675_v10 }
 0x566   :  { %v553_v14 = vmul.f32 %v3761_v11, %v537_v48  ;;  %v1121_v20 = vpop.permute.xlu1 %1120 }
 0x567   :  { %3514 = vmatprep.subr.msk.bf16.mxu1 %vm4262_vm8, %v3512_v13 }
 0x568   :  { %v562_v15 = vmul.f32 %v4207_v62, %v553_v14  ;;  %v1123_v62 = vpop.permute.xlu0 %1122 }
 0x56a   :  { %v571_v16 = vadd.f32 %v4210_v2, %v562_v15  ;;  %v788_v2 = vlaneseq }
 0x56c   :  { %582 = vst.msk [vmem:[#allocation2 + $0x1a] sm:$0xf] %vm287_vm4, %v571_v16  ;;  %v4288_v21 = vshrl.u32 %v788_v2, 7 }
 0x56e   :  { %v790_v22 = vsub.s32 0, %v4288_v21 }
 0x570   :  { %v4295_v25 = vrot.slane %v4292_v24, %v790_v22 }
 0x573   :  { %v586_v17 = vld [vmem:[#allocation2 + $0x18] sm:$0xff] }
 0x574   :  { %3302 = vmatmul.mubr.msk.f32.gmra.mrb[2].mxu1 %vm145_vm3, %v586_v17 }
 0x575   :  { %3322 = vmatprep.mubr.msk.f32.mxu1 %vm702_vm7, %v906_v4 }
 0x578   :  { %3323 = vmatmul.mubr.msk.f32.vlgmr.msra.gmra.mrb[4].mxu1 %vm702_vm7, %v908_v19 }
 0x579   :  { %3517 = vmatpush3.bf16.xpose.msk.msra.mxu1 %vm4262_vm8, %v3512_v13  ;;  %3336 = vmatprep.mubr.msk.f32.mxu1 %vm702_vm7, %v1121_v20 }
 0x580   :  { %3337 = vmatmul.mubr.msk.f32.vlgmr.msra.gmra.mrb[6].mxu1 %vm702_vm7, %v1123_v62 }
 0x5c9   :  { %v3310_v27 = vpop.f32.mrb[4].mxu0 }
 0x5ca   :  { %v787_v28 = vmul.f32 0.35355338, %v3310_v27  ;;  %v777_v29 = vpop.f32.mrb[5].mxu0 }
 0x5cb   :  { %v786_v30 = vmul.f32 0.35355338, %v777_v29 }
 0x5cc   :  { %v793_v31 = vadd.f32 %v4295_v25, %v787_v28 }
 0x5cd   :  { %v792_v32 = vadd.f32 %v4295_v25, %v786_v30 }
 0x5ce   :  { %v797_v33 = vsel %vm202_vm0, %v793_v31, -inf }
 0x5cf   :  { %798 = vmax.xlane.f32.xlu0 %v797_v33  ;;  %v794_v34 = vsel %vm202_vm0, %v792_v32, -inf }
 0x5d0   :  { %795 = vmax.xlane.f32.xlu1 %v794_v34 }
 0x647   :  { %v4301_v36 = vpop.f32.mrb[2].mxu1 }
 0x648   :  { %v4303_v35 = vpop.f32.mrb[3].mxu1 }
 0x64b   :  { %v3324_v38 = vpop.f32.mrb[4].mxu1 }
 0x64c   :  { %v987_v39 = vpop.f32.mrb[5].mxu1  ;;  %v997_v40 = vmul.f32 0.35355338, %v3324_v38 }
 0x64d   :  { %v996_v41 = vmul.f32 0.35355338, %v987_v39 }
 0x64e   :  { %v999_v63 = vadd.f32 %v997_v40, %v4295_v25 }
 0x64f   :  { %v998_v55 = vadd.f32 %v996_v41, %v4295_v25 }
 0x650   :  { %v1003_v44 = vsel %vm202_vm0, %v999_v63, -inf }
 0x651   :  { %v1000_v12 = vsel %vm202_vm0, %v998_v55, -inf }
 0x652   :  { %1001 = vmax.xlane.f32.xlu0 %v1000_v12 }
 0x653   :  { %v3338_v6 = vpop.f32.mrb[6].mxu1 }
 0x654   :  { %v1212_v9 = vmul.f32 0.35355338, %v3338_v6  ;;  %v1202_v42 = vpop.f32.mrb[7].mxu1 }
 0x655   :  { %v1211_v43 = vmul.f32 0.35355338, %v1202_v42 }
 0x656   :  { %1004 = vmax.xlane.f32.xlu0 %v1003_v44  ;;  %v1214_v45 = vadd.f32 %v1212_v9, %v4295_v25 }
 0x657   :  { %v1213_v46 = vadd.f32 %v1211_v43, %v4295_v25 }
 0x658   :  { %v1218_v48 = vsel %vm202_vm0, %v1214_v45, -inf }
 0x659   :  { %v1215_v47 = vsel %vm202_vm0, %v1213_v46, -inf }
 0x65a   :  { %1216 = vmax.xlane.f32.xlu1 %v1215_v47  ;;  %1219 = vmax.xlane.f32.xlu0 %v1218_v48 }
 0x65c   :  { %v799_v49 = vpop.xlane.xlu0 %798 }
 0x65d   :  { %v801_v50 = vsub.f32 %v793_v31, %v799_v49  ;;  %v796_v26 = vpop.xlane.xlu1 %795 }
 0x65e   :  { %v800_v53 = vsub.f32 %v792_v32, %v796_v26 }
 0x65f   :  { %v804_v51 = vmul.f32 1.442695, %v801_v50 }
 0x660   :  { %v802_v56 = vmul.f32 1.442695, %v800_v53 }
 0x661   :  { %3762 = vpow2.f32 %v804_v51 }
 0x662   :  { %3764 = vpow2.f32 %v802_v56 }
 0x66b   :  { %v3763_v52 = vpop.eup %3762  ;;  %3678 = vrot.lane.b32.xlu1 %v4239_v5, %s3922_s20 }
 0x66c   :  { %v809_v23 = vsel %vm202_vm0, %v3763_v52, 0.0  ;;  %v3765_v57 = vpop.eup %3764 }
 0x66d   :  { %810 = vadd.xlane.f32.xlu0 %v809_v23  ;;  %v806_v59 = vsel %vm202_vm0, %v3765_v57, 0.0 }
 0x68f   :  { %807 = vadd.xlane.f32.xlu1 %v806_v59 }
 0x6df   :  { %v1002_v60 = vpop.xlane.xlu0 %1001 }
 0x6e0   :  { %v1006_v61 = vsub.f32 %v998_v55, %v1002_v60 }
 0x6e2   :  { %v1008_v0 = vmul.f32 1.442695, %v1006_v61 }
 0x6e3   :  { %v1005_v3 = vpop.xlane.xlu0 %1004 }
 0x6e4   :  { %3766 = vpow2.f32 %v1008_v0  ;;  %v1007_v18 = vsub.f32 %v999_v63, %v1005_v3 }
 0x6e6   :  { %v1010_v4 = vmul.f32 1.442695, %v1007_v18 }
 0x6e7   :  { %v1217_v7 = vpop.xlane.xlu1 %1216  ;;  %v1220_v8 = vpop.xlane.xlu0 %1219 }
 0x6e8   :  { %3768 = vpow2.f32 %v1010_v4  ;;  %v1222_v10 = vsub.f32 %v1214_v45, %v1220_v8  ;;  %v1221_v27 = vsub.f32 %v1213_v46, %v1217_v7 }
 0x6ea   :  { %v1225_v11 = vmul.f32 1.442695, %v1222_v10  ;;  %v1223_v28 = vmul.f32 1.442695, %v1221_v27 }
 0x6eb   :  { %v3679_v13 = vpop.permute.xlu1 %3678 }
 0x6ec   :  { %v3681_v14 = vunpack.i.h.bf16 %v3679_v13  ;;  %v3680_v15 = vunpack.i.l.bf16 %v3679_v13  ;;  %3770 = vpow2.f32 %v1225_v11 }
 0x6ed   :  { %3772 = vpow2.f32 %v1223_v28 }
 0x6ee   :  { %v3767_v16 = vpop.eup %3766  ;;  %v3498_v17 = vpack.c.bf16 %v3681_v14, %v3680_v15 }
 0x6ef   :  { %v1012_v19 = vsel %vm202_vm0, %v3767_v16, 0.0 }
 0x6f0   :  { %3499 = vmatprep.subr.bf16.mxu0 %v3498_v17  ;;  %1013 = vadd.xlane.f32.xlu1 %v1012_v19 }
 0x6f1   :  { %3501 = vmatpush3.bf16.msra.mxu0 %v3498_v17 }
 0x6f2   :  { %v3769_v20 = vpop.eup %3768 }
 0x6f3   :  { %v1015_v62 = vsel %vm202_vm0, %v3769_v20, 0.0 }
 0x6f4   :  { %1016 = vadd.xlane.f32.xlu0 %v1015_v62 }
 0x6f6   :  { %v3771_v2 = vpop.eup %3770 }
 0x6f7   :  { %v1230_v22 = vsel %vm202_vm0, %v3771_v2, 0.0  ;;  %v3773_v31 = vpop.eup %3772 }
 0x6f8   :  { %1231 = vadd.xlane.f32.xlu0 %v1230_v22  ;;  %v1227_v34 = vsel %vm202_vm0, %v3773_v31, 0.0 }
 0x6fa   :  { %v811_v29 = vpop.xlane.xlu0 %810 }
 0x6fb   :  { %3774 = vrcp.f32 %v811_v29 }
 0x701   :  { %3688 = vrot.lane.b32.xlu1 %v4239_v5, %s3923_s27 }
 0x705   :  { %3693 = vrot.lane.b32.xlu1 %v4239_v5, %s3924_s15  ;;  %v3775_v32 = vpop.eup %3774 }
 0x706   :  { %v815_v39 = vmul.f32 %v3775_v32, %v3763_v52 }
 0x70e   :  { %3683 = vrot.lane.b32.xlu0 %v4239_v5, %s3925_s16 }
 0x712   :  { %1337 = vrot.lane.b32.xlu0 %v4230_v58, %s3926_s18 }
 0x71c   :  { %v808_v30 = vpop.xlane.xlu1 %807 }
 0x71d   :  { %3776 = vrcp.f32 %v808_v30 }
 0x727   :  { %v3777_v33 = vpop.eup %3776 }
 0x728   :  { %v813_v38 = vmul.f32 %v3777_v33, %v3765_v57  ;;  %v4363_v33 = vadd.f32 %v4301_v36, %v4227_v37 }
 0x729   :  { %1228 = vadd.xlane.f32.xlu1 %v1227_v34  ;;  %v4367_v34 = vadd.f32 %v4227_v37, %v4303_v35 }
 0x72a   :  { %3315 = vmatprep.mubr.msk.f32.mxu0 %vm202_vm0, %v813_v38 }
 0x72b   :  { %3316 = vmatmul.mubr.msk.f32.vlgmr.msra.gmra.mrb[6].mxu0 %vm202_vm0, %v815_v39  ;;  %v4371_v38 = vpack.i.bf16 %v4363_v33, %v4367_v34 }
 0x73a   :  { %1335 = vrot.lane.b32.xlu1 %v4233_v1, %s3926_s18 }
 0x77d   :  { %v1014_v58 = vpop.xlane.xlu1 %1013 }
 0x77e   :  { %3778 = vrcp.f32 %v1014_v58 }
 0x781   :  { %v1017_v40 = vpop.xlane.xlu0 %1016  ;;  %v3689_v41 = vpop.permute.xlu1 %3688 }
 0x782   :  { %3780 = vrcp.f32 %v1017_v40  ;;  %v3691_v9 = vunpack.i.h.bf16 %v3689_v41  ;;  %v3690_v42 = vunpack.i.l.bf16 %v3689_v41 }
 0x784   :  { %v3518_v48 = vpack.c.bf16 %v3691_v9, %v3690_v42  ;;  %v1643_v42 = vsub.s32 1, %v4288_v21 }
 0x785   :  { %v1232_v55 = vpop.xlane.xlu0 %1231  ;;  %v3694_v45 = vpop.permute.xlu1 %3693 }
 0x786   :  { %v3696_v1 = vunpack.i.h.bf16 %v3694_v45  ;;  %v3695_v49 = vunpack.i.l.bf16 %v3694_v45  ;;  %3782 = vrcp.f32 %v1232_v55 }
 0x788   :  { %v3779_v12 = vpop.eup %3778  ;;  %v3522_v51 = vpack.c.bf16 %v3696_v1, %v3695_v49 }
 0x789   :  { %v1019_v63 = vmul.f32 %v3779_v12, %v3767_v16  ;;  %v3684_v6 = vpop.permute.xlu0 %3683 }
 0x78a   :  { %v3686_v43 = vunpack.i.h.bf16 %v3684_v6  ;;  %v3685_v44 = vunpack.i.l.bf16 %v3684_v6 }
 0x78b   :  { %3329 = vmatprep.mubr.msk.f32.mxu0 %vm202_vm0, %v1019_v63 }
 0x78c   :  { %v3508_v46 = vpack.c.bf16 %v3686_v43, %v3685_v44  ;;  %v3781_v47 = vpop.eup %3780  ;;  %v4391_v43 = vrot.slane %v4292_v24, %v1643_v42 }
 0x78d   :  { %v1021_v50 = vmul.f32 %v3781_v47, %v3769_v20  ;;  %v1338_v59 = vpop.permute.xlu0 %1337 }
 0x78e   :  { %3509 = vmatprep.subr.bf16.mxu0 %v3508_v46 }
 0x78f   :  { %3511 = vmatpush3.bf16.msra.mxu0 %v3508_v46 }
 0x790   :  { %3519 = vmatprep.subr.bf16.mxu0 %v3518_v48  ;;  %v3783_v23 = vpop.eup %3782 }
 0x791   :  { %v1236_v56 = vmul.f32 %v3783_v23, %v3771_v2 }
 0x792   :  { %3330 = vmatmul.mubr.msk.f32.vlgmr.msra.gmra.mrb[8].mxu0 %vm202_vm0, %v1021_v50 }
 0x793   :  { %3521 = vmatpush3.bf16.msra.mxu0 %v3518_v48 }
 0x794   :  { %3524 = vmatprep.subr.msk.bf16.mxu0 %vm4262_vm8, %v3522_v51 }
 0x7b6   :  { %v1229_v52 = vpop.xlane.xlu1 %1228 }
 0x7b7   :  { %3784 = vrcp.f32 %v1229_v52 }
 0x7ba   :  { %v1336_v57 = vpop.permute.xlu1 %1335 }
 0x7c1   :  { %v3785_v26 = vpop.eup %3784 }
 0x7c2   :  { %v1234_v53 = vmul.f32 %v3785_v26, %v3773_v31 }
 0x7c4   :  { %3343 = vmatprep.mubr.msk.f32.mxu0 %vm202_vm0, %v1234_v53 }
 0x7c5   :  { %3344 = vmatmul.mubr.msk.f32.vlgmr.msra.gmra.mrb[10].mxu0 %vm202_vm0, %v1236_v56 }
 0x7c6   :  { %3527 = vmatpush3.bf16.xpose.msk.msra.mxu0 %vm4262_vm8, %v3522_v51  ;;  %3350 = vmatprep.mubr.msk.f32.mxu0 %vm702_vm7, %v1336_v57 }
 0x7cd   :  { %3351 = vmatmul.mubr.msk.f32.vlgmr.msra.gmra.mrb[12].mxu0 %vm702_vm7, %v1338_v59 }
 0x7fe   :  { %v3317_v60 = vpop.f32.mrb[6].mxu0 }
 0x7ff   :  { %904 = vst.msk [vmem:[#allocation3 + $0x8] sm:$0xff] %vm702_vm7, %v3317_v60  ;;  %v894_v61 = vpop.f32.mrb[7].mxu0 }
 0x800   :  { %903 = vst.msk [vmem:[#allocation3] sm:$0xff] %vm702_vm7, %v894_v61 }
 0x865   :  { %v4345_v0 = vpop.f32.mrb[8].mxu0 }
 0x866   :  { %v4347_v3 = vpop.f32.mrb[9].mxu0 }
 0x898   :  { %v4349_v18 = vpop.f32.mrb[10].mxu0 }
 0x899   :  { %v4351_v4 = vpop.f32.mrb[11].mxu0 }
 0x8a0   :  { %v3352_v7 = vpop.f32.mrb[12].mxu0 }
 0x8a1   :  { %v1427_v8 = vmul.f32 0.35355338, %v3352_v7  ;;  %v1417_v10 = vpop.f32.mrb[13].mxu0 }
 0x8a2   :  { %v1426_v11 = vmul.f32 0.35355338, %v1417_v10 }
 0x8a3   :  { %v1429_v13 = vadd.f32 %v1427_v8, %v4295_v25 }
 0x8a4   :  { %v1428_v14 = vadd.f32 %v1426_v11, %v4295_v25 }
 0x8a5   :  { %v1433_v15 = vsel %vm202_vm0, %v1429_v13, -inf }
 0x8a6   :  { %1434 = vmax.xlane.f32.xlu0 %v1433_v15  ;;  %v1430_v16 = vsel %vm202_vm0, %v1428_v14, -inf }
 0x8a7   :  { %1431 = vmax.xlane.f32.xlu1 %v1430_v16 }
 0x8b8   :  { %3698 = vrot.lane.b32.xlu1 %v4239_v5, %s3927_s22 }
 0x933   :  { %v1435_v17 = vpop.xlane.xlu0 %1434 }
 0x934   :  { %v1437_v19 = vsub.f32 %v1429_v13, %v1435_v17  ;;  %v1432_v20 = vpop.xlane.xlu1 %1431 }
 0x935   :  { %v1436_v62 = vsub.f32 %v1428_v14, %v1432_v20 }
 0x936   :  { %v1440_v2 = vmul.f32 1.442695, %v1437_v19 }
 0x937   :  { %v1438_v22 = vmul.f32 1.442695, %v1436_v62 }
 0x938   :  { %3786 = vpow2.f32 %v1440_v2  ;;  %v3699_v27 = vpop.permute.xlu1 %3698 }
 0x939   :  { %v3701_v28 = vunpack.i.h.bf16 %v3699_v27  ;;  %v3700_v25 = vunpack.i.l.bf16 %v3699_v27  ;;  %3788 = vpow2.f32 %v1438_v22 }
 0x93b   :  { %v3528_v29 = vpack.c.bf16 %v3701_v28, %v3700_v25 }
 0x93d   :  { %3529 = vmatprep.subr.bf16.mxu1 %v3528_v29 }
 0x93e   :  { %3531 = vmatpush3.bf16.msra.mxu1 %v3528_v29 }
 0x942   :  { %v3787_v30 = vpop.eup %3786 }
 0x943   :  { %v1445_v31 = vsel %vm202_vm0, %v3787_v30, 0.0  ;;  %v3789_v32 = vpop.eup %3788 }
 0x944   :  { %1446 = vadd.xlane.f32.xlu0 %v1445_v31  ;;  %v1442_v5 = vsel %vm202_vm0, %v3789_v32, 0.0 }
 0x948   :  { %1443 = vadd.xlane.f32.xlu0 %v1442_v5 }
 0x95e   :  { %3703 = vrot.lane.b32.xlu0 %v4371_v38, %s3917_s14 }
 0x9d1   :  { %v1447_v39 = vpop.xlane.xlu0 %1446 }
 0x9d2   :  { %3790 = vrcp.f32 %v1447_v39 }
 0x9d5   :  { %v1444_v58 = vpop.xlane.xlu0 %1443 }
 0x9d6   :  { %3792 = vrcp.f32 %v1444_v58 }
 0x9d9   :  { %v3704_v40 = vpop.permute.xlu0 %3703 }
 0x9da   :  { %v3706_v41 = vunpack.i.h.bf16 %v3704_v40  ;;  %v3705_v55 = vunpack.i.l.bf16 %v3704_v40 }
 0x9dc   :  { %v3532_v36 = vpack.c.bf16 %v3706_v41, %v3705_v55  ;;  %v3791_v37 = vpop.eup %3790 }
 0x9dd   :  { %v1451_v63 = vmul.f32 %v3791_v37, %v3787_v30 }
 0x9de   :  { %3534 = vmatprep.subr.msk.bf16.mxu1 %vm4262_vm8, %v3532_v36 }
 0x9e0   :  { %v3793_v35 = vpop.eup %3792 }
 0x9e1   :  { %v1449_v12 = vmul.f32 %v3793_v35, %v3789_v32 }
 0x9e3   :  { %3357 = vmatprep.mubr.msk.f32.mxu1 %vm202_vm0, %v1449_v12 }
 0x9e4   :  { %3358 = vmatmul.mubr.msk.f32.vlgmr.msra.gmra.mrb[8].mxu1 %vm202_vm0, %v1451_v63 }
 0x9e5   :  { %3537 = vmatpush3.bf16.xpose.msk.msra.mxu1 %vm4262_vm8, %v3532_v36  ;;  %3364 = vmatprep.mubr.msk.f32.mxu1 %vm702_vm7, %v4367_v34 }
 0x9ec   :  { %3365 = vmatmul.mubr.msk.f32.vlgmr.msra.gmra.mrb[10].mxu1 %vm702_vm7, %v4363_v33 }
 0xab7   :  { %v4385_v6 = vpop.f32.mrb[8].mxu1 }
 0xab8   :  { %v4387_v9 = vpop.f32.mrb[9].mxu1 }
 0xabf   :  { %v3366_v44 = vpop.f32.mrb[10].mxu1 }
 0xac0   :  { %v1640_v45 = vmul.f32 0.35355338, %v3366_v44  ;;  %v1630_v46 = vpop.f32.mrb[11].mxu1 }
 0xac1   :  { %v1639_v47 = vmul.f32 0.35355338, %v1630_v46 }
 0xac2   :  { %v1646_v48 = vadd.f32 %v4391_v43, %v1640_v45 }
 0xac3   :  { %v1645_v1 = vadd.f32 %v4391_v43, %v1639_v47 }
 0xac4   :  { %v1650_v49 = vsel %vm202_vm0, %v1646_v48, -inf }
 0xac5   :  { %1651 = vmax.xlane.f32.xlu0 %v1650_v49  ;;  %v1647_v50 = vsel %vm202_vm0, %v1645_v1, -inf }
 0xac6   :  { %1648 = vmax.xlane.f32.xlu1 %v1647_v50 }
 0xad7   :  { %3708 = vrot.lane.b32.xlu1 %v4371_v38, %s3922_s20 }
 0xadb   :  { %1758 = vrot.lane.b32.xlu1 %v4367_v34, %s3918_s19 }
 0xb52   :  { %v1652_v21 = vpop.xlane.xlu0 %1651 }
 0xb53   :  { %v1654_v24 = vsub.f32 %v1646_v48, %v1652_v21  ;;  %v1649_v51 = vpop.xlane.xlu1 %1648 }
 0xb54   :  { %v1653_v52 = vsub.f32 %v1645_v1, %v1649_v51 }
 0xb55   :  { %v1657_v23 = vmul.f32 1.442695, %v1654_v24 }
 0xb56   :  { %v1655_v26 = vmul.f32 1.442695, %v1653_v52 }
 0xb57   :  { %3794 = vpow2.f32 %v1657_v23  ;;  %v3709_v53 = vpop.permute.xlu1 %3708 }
 0xb58   :  { %3796 = vpow2.f32 %v1655_v26  ;;  %v3711_v56 = vunpack.i.h.bf16 %v3709_v53  ;;  %v3710_v57 = vunpack.i.l.bf16 %v3709_v53 }
 0xb5a   :  { %v3538_v59 = vpack.c.bf16 %v3711_v56, %v3710_v57 }
 0xb5b   :  { %v1759_v10 = vpop.permute.xlu1 %1758 }
 0xb5c   :  { %3539 = vmatprep.subr.bf16.mxu0 %v3538_v59 }
 0xb5d   :  { %3541 = vmatpush3.bf16.msra.mxu0 %v3538_v59 }
 0xb61   :  { %v3795_v60 = vpop.eup %3794 }
 0xb62   :  { %v3797_v61 = vpop.eup %3796  ;;  %v1662_v7 = vsel %vm202_vm0, %v3795_v60, 0.0 }
 0xb63   :  { %1663 = vadd.xlane.f32.xlu0 %v1662_v7  ;;  %v1659_v8 = vsel %vm202_vm0, %v3797_v61, 0.0 }
 0xb64   :  { %1660 = vadd.xlane.f32.xlu1 %v1659_v8 }
 0xb75   :  { %1760 = vrot.lane.b32.xlu1 %v4363_v33, %s3918_s19 }
 0xb79   :  { %3713 = vrot.lane.b32.xlu0 %v4371_v38, %s3920_s30 }
 0xbf0   :  { %v1664_v11 = vpop.xlane.xlu0 %1663 }
 0xbf1   :  { %3798 = vrcp.f32 %v1664_v11  ;;  %v1661_v13 = vpop.xlane.xlu1 %1660 }
 0xbf2   :  { %3800 = vrcp.f32 %v1661_v13 }
 0xbf4   :  { %v3714_v14 = vpop.permute.xlu0 %3713 }
 0xbf5   :  { %v3716_v15 = vunpack.i.h.bf16 %v3714_v14  ;;  %v3715_v16 = vunpack.i.l.bf16 %v3714_v14  ;;  %v1761_v22 = vpop.permute.xlu1 %1760 }
 0xbf7   :  { %v3542_v17 = vpack.c.bf16 %v3716_v15, %v3715_v16 }
 0xbf9   :  { %3544 = vmatprep.subr.msk.bf16.mxu0 %vm4262_vm8, %v3542_v17 }
 0xbfb   :  { %v3799_v19 = vpop.eup %3798 }
 0xbfc   :  { %v3801_v20 = vpop.eup %3800  ;;  %v1668_v2 = vmul.f32 %v3799_v19, %v3795_v60 }
 0xbfd   :  { %v1666_v62 = vmul.f32 %v3801_v20, %v3797_v61 }
 0xbff   :  { %3371 = vmatprep.mubr.msk.f32.mxu0 %vm202_vm0, %v1666_v62 }
 0xc00   :  { %3372 = vmatmul.mubr.msk.f32.vlgmr.msra.gmra.mrb[14].mxu0 %vm202_vm0, %v1668_v2 }
 0xc01   :  { %3547 = vmatpush3.bf16.xpose.msk.msra.mxu0 %vm4262_vm8, %v3542_v17  ;;  %3378 = vmatprep.mubr.msk.f32.mxu0 %vm702_vm7, %v1759_v10 }
 0xc08   :  { %3379 = vmatmul.mubr.msk.f32.vlgmr.msra.gmra.mrb[16].mxu0 %vm702_vm7, %v1761_v22 }
 0xcd3   :  { %v3373_v27 = vpop.f32.mrb[14].mxu0 }
 0xcd4   :  { %1757 = vst.msk [vmem:[#allocation3 + $0x18] sm:$0xff] %vm702_vm7, %v3373_v27  ;;  %v1747_v28 = vpop.f32.mrb[15].mxu0 }
 0xcd5   :  { %1756 = vst.msk [vmem:[#allocation3 + $0x10] sm:$0xff] %vm702_vm7, %v1747_v28 }
 0xcdb   :  { %v3380_v25 = vpop.f32.mrb[16].mxu0 }
 0xcdc   :  { %v1850_v29 = vmul.f32 0.35355338, %v3380_v25  ;;  %v1840_v30 = vpop.f32.mrb[17].mxu0 }
 0xcdd   :  { %v1849_v31 = vmul.f32 0.35355338, %v1840_v30 }
 0xcde   :  { %v1852_v32 = vadd.f32 %v1850_v29, %v4391_v43 }
 0xcdf   :  { %v1851_v5 = vadd.f32 %v1849_v31, %v4391_v43 }
 0xce0   :  { %v1856_v39 = vsel %vm202_vm0, %v1852_v32, -inf }
 0xce1   :  { %1857 = vmax.xlane.f32.xlu0 %v1856_v39  ;;  %v1853_v58 = vsel %vm202_vm0, %v1851_v5, -inf }
 0xce2   :  { %1854 = vmax.xlane.f32.xlu1 %v1853_v58 }
 0xcf3   :  { %3718 = vrot.lane.b32.xlu1 %v4371_v38, %s3925_s16 }
 0xcf7   :  { %1972 = vrot.lane.b32.xlu1 %v4367_v34, %s3919_s24 }
 0xcfb   :  { %1974 = vrot.lane.b32.xlu1 %v4363_v33, %s3919_s24 }
 0xd6e   :  { %v1858_v40 = vpop.xlane.xlu0 %1857 }
 0xd6f   :  { %v1860_v41 = vsub.f32 %v1852_v32, %v1858_v40  ;;  %v1855_v55 = vpop.xlane.xlu1 %1854 }
 0xd70   :  { %v1859_v36 = vsub.f32 %v1851_v5, %v1855_v55 }
 0xd71   :  { %v1863_v37 = vmul.f32 1.442695, %v1860_v41 }
 0xd72   :  { %v1861_v35 = vmul.f32 1.442695, %v1859_v36 }
 0xd73   :  { %3802 = vpow2.f32 %v1863_v37  ;;  %v3719_v12 = vpop.permute.xlu1 %3718 }
 0xd74   :  { %v3721_v63 = vunpack.i.h.bf16 %v3719_v12  ;;  %v3720_v42 = vunpack.i.l.bf16 %v3719_v12  ;;  %3804 = vpow2.f32 %v1861_v35 }
 0xd76   :  { %v3548_v44 = vpack.c.bf16 %v3721_v63, %v3720_v42 }
 0xd77   :  { %v1973_v56 = vpop.permute.xlu1 %1972 }
 0xd78   :  { %3549 = vmatprep.subr.bf16.mxu1 %v3548_v44 }
 0xd79   :  { %3551 = vmatpush3.bf16.msra.mxu1 %v3548_v44 }
 0xd7b   :  { %v1975_v57 = vpop.permute.xlu1 %1974 }
 0xd7d   :  { %v3803_v45 = vpop.eup %3802 }
 0xd7e   :  { %v1868_v46 = vsel %vm202_vm0, %v3803_v45, 0.0  ;;  %v3805_v47 = vpop.eup %3804 }
 0xd7f   :  { %1869 = vadd.xlane.f32.xlu0 %v1868_v46  ;;  %v1865_v48 = vsel %vm202_vm0, %v3805_v47, 0.0 }
 0xd83   :  { %1866 = vadd.xlane.f32.xlu0 %v1865_v48 }
 0xd99   :  { %3723 = vrot.lane.b32.xlu0 %v4371_v38, %s3921_s6 }
 0xe0c   :  { %v1870_v1 = vpop.xlane.xlu0 %1869 }
 0xe0d   :  { %3806 = vrcp.f32 %v1870_v1 }
 0xe10   :  { %v1867_v49 = vpop.xlane.xlu0 %1866 }
 0xe11   :  { %3808 = vrcp.f32 %v1867_v49 }
 0xe14   :  { %v3724_v50 = vpop.permute.xlu0 %3723 }
 0xe15   :  { %v3726_v21 = vunpack.i.h.bf16 %v3724_v50  ;;  %v3725_v24 = vunpack.i.l.bf16 %v3724_v50 }
 0xe17   :  { %v3552_v51 = vpack.c.bf16 %v3726_v21, %v3725_v24  ;;  %v3807_v52 = vpop.eup %3806 }
 0xe18   :  { %v1874_v53 = vmul.f32 %v3807_v52, %v3803_v45 }
 0xe19   :  { %3554 = vmatprep.subr.msk.bf16.mxu1 %vm4262_vm8, %v3552_v51 }
 0xe1b   :  { %v3809_v23 = vpop.eup %3808 }
 0xe1c   :  { %v1872_v26 = vmul.f32 %v3809_v23, %v3805_v47 }
 0xe1e   :  { %3385 = vmatprep.mubr.msk.f32.mxu1 %vm202_vm0, %v1872_v26 }
 0xe1f   :  { %3386 = vmatmul.mubr.msk.f32.vlgmr.msra.gmra.mrb[12].mxu1 %vm202_vm0, %v1874_v53 }
 0xe20   :  { %3557 = vmatpush3.bf16.xpose.msk.msra.mxu1 %vm4262_vm8, %v3552_v51  ;;  %3392 = vmatprep.mubr.msk.f32.mxu1 %vm702_vm7, %v1973_v56 }
 0xe27   :  { %3393 = vmatmul.mubr.msk.f32.vlgmr.msra.gmra.mrb[14].mxu1 %vm702_vm7, %v1975_v57 }
 0xef2   :  { %v4439_v59 = vpop.f32.mrb[12].mxu1 }
 0xef3   :  { %v4441_v60 = vpop.f32.mrb[13].mxu1 }
 0xefa   :  { %v3394_v61 = vpop.f32.mrb[14].mxu1 }
 0xefb   :  { %v2064_v7 = vmul.f32 0.35355338, %v3394_v61  ;;  %v2054_v8 = vpop.f32.mrb[15].mxu1 }
 0xefc   :  { %v2063_v10 = vmul.f32 0.35355338, %v2054_v8 }
 0xefd   :  { %v2066_v11 = vadd.f32 %v2064_v7, %v4391_v43 }
 0xefe   :  { %v2065_v13 = vadd.f32 %v2063_v10, %v4391_v43  ;;  %v2404_v10 = vld [vmem:[%s4611_s1] sm:$0xff] }
 0xeff   :  { %v2070_v14 = vsel %vm202_vm0, %v2066_v11, -inf }
 0xf00   :  { %2071 = vmax.xlane.f32.xlu0 %v2070_v14  ;;  %v2067_v15 = vsel %vm202_vm0, %v2065_v13, -inf }
 0xf01   :  { %2068 = vmax.xlane.f32.xlu1 %v2067_v15 }
 0xf12   :  { %3728 = vrot.lane.b32.xlu1 %v4371_v38, %s3923_s27 }
 0xf16   :  { %2186 = vrot.lane.b32.xlu1 %v4367_v34, %s3926_s18 }
 0xf1a   :  { %2188 = vrot.lane.b32.xlu1 %v4363_v33, %s3926_s18 }
 0xf8d   :  { %v2072_v16 = vpop.xlane.xlu0 %2071 }
 0xf8e   :  { %v2074_v17 = vsub.f32 %v2066_v11, %v2072_v16  ;;  %v2069_v19 = vpop.xlane.xlu1 %2068  ;;  %v2405_v11 = vld [vmem:[%s4611_s1 + $0x8] sm:$0xff] }
 0xf8f   :  { %v2073_v20 = vsub.f32 %v2065_v13, %v2069_v19  ;;  %v3572_v13 = vpack.c.bf16 %v2405_v11, %v2404_v10 }
 0xf90   :  { %v2077_v62 = vmul.f32 1.442695, %v2074_v17 }
 0xf91   :  { %v2075_v2 = vmul.f32 1.442695, %v2073_v20  ;;  %v2407_v20 = vld [vmem:[%s4611_s1 + $0x18] sm:$0xff] }
 0xf92   :  { %3810 = vpow2.f32 %v2077_v62  ;;  %v3729_v22 = vpop.permute.xlu1 %3728 }
 0xf93   :  { %v3731_v27 = vunpack.i.h.bf16 %v3729_v22  ;;  %v3730_v28 = vunpack.i.l.bf16 %v3729_v22  ;;  %3812 = vpow2.f32 %v2075_v2 }
 0xf95   :  { %v3558_v25 = vpack.c.bf16 %v3731_v27, %v3730_v28 }
 0xf96   :  { %v2187_v35 = vpop.permute.xlu1 %2186 }
 0xf97   :  { %3559 = vmatprep.subr.bf16.mxu0 %v3558_v25 }
 0xf98   :  { %3561 = vmatpush3.bf16.msra.mxu0 %v3558_v25 }
 0xf9a   :  { %v2189_v12 = vpop.permute.xlu1 %2188 }
 0xf9c   :  { %v3811_v29 = vpop.eup %3810 }
 0xf9d   :  { %v2082_v34 = vsel %vm202_vm0, %v3811_v29, 0.0  ;;  %v3813_v30 = vpop.eup %3812 }
 0xf9e   :  { %2083 = vadd.xlane.f32.xlu0 %v2082_v34  ;;  %v2079_v33 = vsel %vm202_vm0, %v3813_v30, 0.0 }
 0xfa2   :  { %2080 = vadd.xlane.f32.xlu0 %v2079_v33 }
 0xfb8   :  { %3733 = vrot.lane.b32.xlu0 %v4371_v38, %s3924_s15 }
0x102b   :  { %v2084_v31 = vpop.xlane.xlu0 %2083 }
0x102c   :  { %3814 = vrcp.f32 %v2084_v31  ;;  %v3139_v31 = vld [vmem:[%s4612_s2] ss:$0 sm:$0xff] }
0x102f   :  { %v2081_v32 = vpop.xlane.xlu0 %2080 }
0x1030   :  { %3816 = vrcp.f32 %v2081_v32 }
0x1033   :  { %v3734_v5 = vpop.permute.xlu0 %3733 }
0x1034   :  { %v3736_v39 = vunpack.i.h.bf16 %v3734_v5  ;;  %v3735_v58 = vunpack.i.l.bf16 %v3734_v5 }
0x1036   :  { %v3562_v40 = vpack.c.bf16 %v3736_v39, %v3735_v58  ;;  %v3815_v41 = vpop.eup %3814  ;;  %v3854_v39 = vld [vmem:[#allocation2] sm:$0xff] }
0x1037   :  { %v2088_v37 = vmul.f32 %v3815_v41, %v3811_v29  ;;  %v3855_v41 = vld [vmem:[#allocation2 + $0x8] sm:$0xff] }
0x1038   :  { %3564 = vmatprep.subr.msk.bf16.mxu0 %vm4262_vm8, %v3562_v40 }
0x103a   :  { %v3817_v55 = vpop.eup %3816 }
0x103b   :  { %v2086_v36 = vmul.f32 %v3817_v55, %v3813_v30 }
0x103d   :  { %3399 = vmatprep.mubr.msk.f32.mxu0 %vm202_vm0, %v2086_v36 }
0x103e   :  { %3400 = vmatmul.mubr.msk.f32.vlgmr.msra.gmra.mrb[18].mxu0 %vm202_vm0, %v2088_v37 }
0x103f   :  { %3567 = vmatpush3.bf16.xpose.msk.msra.mxu0 %vm4262_vm8, %v3562_v40  ;;  %3406 = vmatprep.mubr.msk.f32.mxu0 %vm702_vm7, %v2187_v35 }
0x1046   :  { %3407 = vmatmul.mubr.msk.f32.vlgmr.msra.gmra.mrb[20].mxu0 %vm702_vm7, %v2189_v12 }
0x1111   :  { %v3401_v63 = vpop.f32.mrb[18].mxu0 }
0x1112   :  { %v2167_v42 = vpop.f32.mrb[19].mxu0 }
0x1119   :  { %v3408_v44 = vpop.f32.mrb[20].mxu0 }
0x111a   :  { %v2278_v45 = vmul.f32 0.35355338, %v3408_v44  ;;  %v2268_v46 = vpop.f32.mrb[21].mxu0 }
0x111b   :  { %v2277_v47 = vmul.f32 0.35355338, %v2268_v46 }
0x111c   :  { %v2280_v48 = vadd.f32 %v2278_v45, %v4391_v43 }
0x111d   :  { %v2279_v1 = vadd.f32 %v2277_v47, %v4391_v43 }
0x111e   :  { %v2284_v49 = vsel %vm202_vm0, %v2280_v48, -inf }
0x111f   :  { %2285 = vmax.xlane.f32.xlu0 %v2284_v49  ;;  %v2281_v54 = vsel %vm202_vm0, %v2279_v1, -inf }
0x1120   :  { %2282 = vmax.xlane.f32.xlu1 %v2281_v54 }
0x1131   :  { %3738 = vrot.lane.b32.xlu1 %v4371_v38, %s3927_s22 }
0x1135   :  { %1113 = vrot.lane.b32.xlu1 %v4345_v0, %s3928_s23 }
0x1139   :  { %1326 = vrot.lane.b32.xlu1 %v4351_v4, %s3929_s26 }
0x113d   :  { %1328 = vrot.lane.b32.xlu1 %v4349_v18, %s3929_s26 }
0x1141   :  { %1543 = vrot.lane.b32.xlu1 %v4385_v6, %s3930_s28 }
0x1145   :  { %1966 = vrot.lane.b32.xlu1 %v4439_v59, %s3928_s23 }
0x1149   :  { %2180 = vrot.lane.b32.xlu1 %v3401_v63, %s3929_s26 }
0x11ac   :  { %v2286_v38 = vpop.xlane.xlu0 %2285 }
0x11ad   :  { %v2288_v43 = vsub.f32 %v2280_v48, %v2286_v38  ;;  %v2283_v50 = vpop.xlane.xlu1 %2282 }
0x11ae   :  { %v2287_v0 = vsub.f32 %v2279_v1, %v2283_v50  ;;  %v3856_v50 = vld [vmem:[#allocation2 + $0x10] sm:$0xff] }
0x11af   :  { %v2291_v21 = vmul.f32 1.442695, %v2288_v43 }
0x11b0   :  { %v2289_v24 = vmul.f32 1.442695, %v2287_v0 }
0x11b1   :  { %v3739_v51 = vpop.permute.xlu1 %3738 }
0x11b2   :  { %3818 = vpow2.f32 %v2289_v24  ;;  %v3741_v4 = vunpack.i.h.bf16 %v3739_v51  ;;  %v3740_v52 = vunpack.i.l.bf16 %v3739_v51  ;;  %v3857_v51 = vld [vmem:[#allocation2 + $0x18] sm:$0xff] }
0x11b3   :  { %3820 = vpow2.f32 %v2291_v21 }
0x11b4   :  { %v3568_v18 = vpack.c.bf16 %v3741_v4, %v3740_v52 }
0x11b5   :  { %v1114_v23 = vpop.permute.xlu1 %1113 }
0x11b6   :  { %1119 = vst.msk [vmem:[#allocation3 + $0x8] sm:$0xff] %vm1117_vm9, %v1114_v23  ;;  %3569 = vmatprep.subr.bf16.mxu1 %v3568_v18 }
0x11b7   :  { %3571 = vmatpush3.bf16.msra.mxu1 %v3568_v18 }
0x11b8   :  { %3573 = vmatprep.subr.bf16.mxu1 %v3572_v13 }
0x11b9   :  { %v1327_v6 = vpop.permute.xlu1 %1326 }
0x11bc   :  { %v3819_v26 = vpop.eup %3818 }
0x11bd   :  { %v1329_v53 = vpop.permute.xlu1 %1328  ;;  %v2293_v56 = vsel %vm202_vm0, %v3819_v26, 0.0  ;;  %v3821_v57 = vpop.eup %3820 }
0x11be   :  { %1334 = vst.msk [vmem:[#allocation3 + $0x8] sm:$0xff] %vm1332_vm10, %v1329_v53  ;;  %2294 = vadd.xlane.f32.xlu0 %v2293_v56  ;;  %v2296_v61 = vsel %vm202_vm0, %v3821_v57, 0.0  ;;  %v2592_v53 = vld [vmem:[%s4613_s7 + $0x10] sm:$0xff] }
0x11c1   :  { %v1544_v59 = vpop.permute.xlu1 %1543 }
0x11c2   :  { %1549 = vst.msk [vmem:[#allocation3 + $0x8] sm:$0xff] %vm1547_vm11, %v1544_v59  ;;  %2297 = vadd.xlane.f32.xlu0 %v2296_v61 }
0x11c5   :  { %v1967_v7 = vpop.permute.xlu1 %1966 }
0x11c6   :  { %1971 = vst.msk [vmem:[#allocation3 + $0x18] sm:$0xff] %vm1117_vm9, %v1967_v7 }
0x11c9   :  { %v2181_v8 = vpop.permute.xlu1 %2180  ;;  %v2401_v25 = vld [vmem:[#allocation3 + $0x8] sm:$0xff] }
0x11ca   :  { %2185 = vst.msk [vmem:[#allocation3 + $0x18] sm:$0xff] %vm1332_vm10, %v2181_v8 }
0x11d8   :  { %1111 = vrot.lane.b32.xlu0 %v4347_v3, %s3928_s23 }
0x11dc   :  { %1541 = vrot.lane.b32.xlu0 %v4387_v9, %s3930_s28  ;;  %v2406_v9 = vld [vmem:[%s4611_s1 + $0x10] sm:$0xff] }
0x11dd   :  { %v3576_v22 = vpack.c.bf16 %v2407_v20, %v2406_v9 }
0x11e0   :  { %1964 = vrot.lane.b32.xlu0 %v4441_v60, %s3928_s23 }
0x11e4   :  { %2178 = vrot.lane.b32.xlu0 %v2167_v42, %s3929_s26 }
0x124b   :  { %v2295_v14 = vpop.xlane.xlu0 %2294 }
0x124c   :  { %3822 = vrcp.f32 %v2295_v14 }
0x124f   :  { %v2298_v15 = vpop.xlane.xlu0 %2297 }
0x1250   :  { %3824 = vrcp.f32 %v2298_v15 }
0x1253   :  { %v1112_v16 = vpop.permute.xlu0 %1111 }
0x1254   :  { %1118 = vst.msk [vmem:[#allocation3] sm:$0xff] %vm1117_vm9, %v1112_v16 }
0x1255   :  { %1333 = vst.msk [vmem:[#allocation3] sm:$0xff] %vm1332_vm10, %v1327_v6  ;;  %v2590_v6 = vld [vmem:[%s4613_s7] sm:$0xff] }
0x1256   :  { %v3823_v3 = vpop.eup %3822 }
0x1257   :  { %v1542_v17 = vpop.permute.xlu0 %1541  ;;  %v2300_v19 = vmul.f32 %v3823_v3, %v3819_v26  ;;  %v2591_v26 = vld [vmem:[%s4613_s7 + $0x8] sm:$0xff] }
0x1258   :  { %1548 = vst.msk [vmem:[#allocation3] sm:$0xff] %vm1547_vm11, %v1542_v17  ;;  %v3580_v56 = vpack.c.bf16 %v2591_v26, %v2590_v6 }
0x1259   :  { %3413 = vmatprep.mubr.msk.f32.mxu1 %vm202_vm0, %v2300_v19 }
0x125a   :  { %v3825_v60 = vpop.eup %3824  ;;  %3581 = vmatprep.subr.bf16.mxu0 %v3580_v56 }
0x125b   :  { %v2302_v62 = vmul.f32 %v3825_v60, %v3821_v57  ;;  %v1965_v2 = vpop.permute.xlu0 %1964  ;;  %v2593_v57 = vld [vmem:[%s4613_s7 + $0x18] sm:$0xff]  ;;  %3583 = vmatpush3.bf16.msra.mxu0 %v3580_v56 }
0x125c   :  { %1970 = vst.msk [vmem:[#allocation3 + $0x10] sm:$0xff] %vm1117_vm9, %v1965_v2  ;;  %v3584_v59 = vpack.c.bf16 %v2593_v57, %v2592_v53 }
0x125d   :  { %3414 = vmatmul.mubr.msk.f32.vlgmr.msra.gmra.mrb[16].mxu1 %vm202_vm0, %v2302_v62 }
0x125e   :  { %3575 = vmatpush3.bf16.msra.mxu1 %v3572_v13  ;;  %3585 = vmatprep.subr.bf16.mxu0 %v3584_v59 }
0x125f   :  { %v2179_v27 = vpop.permute.xlu0 %2178  ;;  %3577 = vmatprep.subr.bf16.mxu1 %v3576_v22  ;;  %v2400_v28 = vld [vmem:[#allocation3] sm:$0xff]  ;;  %3587 = vmatpush3.bf16.msra.mxu0 %v3584_v59 }
0x1260   :  { %2184 = vst.msk [vmem:[#allocation3 + $0x10] sm:$0xff] %vm1332_vm10, %v2179_v27  ;;  %3424 = vmatprep.mubr.msk.f32.mxu1 %vm145_vm3, %v2400_v28  ;;  %v3144_v27 = vld [vmem:[%s4614_s10] ss:$0 sm:$0xff] }
0x1262   :  { %3579 = vmatpush3.bf16.msra.mxu1 %v3576_v22 }
0x1265   :  { %3425 = vmatmul.mubr.msk.f32.vlgmr.msra.gmra.mrb[18].mxu1 %vm145_vm3, %v2401_v25 }
0x1330   :  { %v3415_v29 = vpop.f32.mrb[16].mxu1 }
0x1331   :  { %2394 = vrot.lane.b32.xlu1 %v3415_v29, %s3930_s28  ;;  %v2381_v34 = vpop.f32.mrb[17].mxu1 }
0x1332   :  { %2392 = vrot.lane.b32.xlu0 %v2381_v34, %s3930_s28 }
0x1338   :  { %v3426_v30 = vpop.f32.mrb[18].mxu1 }
0x1339   :  { %v2493_v33 = vpop.f32.mrb[19].mxu1  ;;  %v2499_v5 = vadd.f32 %v3426_v30, %v3139_v31  ;;  %v3145_v30 = vld [vmem:[%s4615_s11] ss:$0 sm:$0xff] }
0x133a   :  { %v2494_v32 = vadd.f32 %v3139_v31, %v2493_v33 }
0x133b   :  { %v2513_v55 = vadd.f32 %v3855_v41, %v2499_v5  ;;  %v2719_v5 = vld [vmem:[%s4616_s0 + $0x8] sm:$0xff] }
0x133c   :  { %v2512_v58 = vadd.f32 %v3854_v39, %v2494_v32  ;;  %v2718_v32 = vld [vmem:[%s4616_s0] sm:$0xff] }
0x133d   :  { %v2519_v36 = vsel %vm145_vm3, %v2513_v55, 0.0  ;;  %v3588_v39 = vpack.c.bf16 %v2719_v5, %v2718_v32 }
0x133e   :  { %v2516_v40 = vsel %vm145_vm3, %v2512_v58, 0.0 }
0x133f   :  { %3589 = vmatprep.subr.bf16.mxu1 %v3588_v39 }
0x1340   :  { %3591 = vmatpush3.bf16.msra.mxu1 %v3588_v39 }
0x1351   :  { %2517 = vadd.xlane.f32.xlu0 %v2516_v40  ;;  %v2721_v40 = vld [vmem:[%s4616_s0 + $0x18] sm:$0xff] }
0x1355   :  { %2520 = vadd.xlane.f32.xlu1 %v2519_v36  ;;  %v2723_v36 = vld [vmem:[%s4616_s0 + $0x28] sm:$0xff] }
0x13a3   :  { %v2395_v37 = vpop.permute.xlu1 %2394 }
0x13a4   :  { %2399 = vst.msk [vmem:[#allocation3 + $0x18] sm:$0xff] %vm1547_vm11, %v2395_v37  ;;  %v2393_v35 = vpop.permute.xlu0 %2392 }
0x13a5   :  { %2398 = vst.msk [vmem:[#allocation3 + $0x10] sm:$0xff] %vm1547_vm11, %v2393_v35  ;;  %v2724_v35 = vld [vmem:[%s4616_s0 + $0x30] sm:$0xff] }
0x13ab   :  { %v2403_v63 = vld [vmem:[#allocation3 + $0x18] sm:$0xff] }
0x13ac   :  { %v2402_v12 = vld [vmem:[#allocation3 + $0x10] sm:$0xff] }
0x13ad   :  { %3427 = vmatprep.mubr.msk.f32.mxu1 %vm145_vm3, %v2402_v12  ;;  %v2725_v12 = vld [vmem:[%s4616_s0 + $0x38] sm:$0xff] }
0x13ae   :  { %3428 = vmatmul.mubr.msk.f32.gmra.mrb[20].mxu1 %vm145_vm3, %v2403_v63  ;;  %v3600_v63 = vpack.c.bf16 %v2725_v12, %v2724_v35 }
0x13de   :  { %v2518_v48 = vpop.xlane.xlu0 %2517 }
0x13df   :  { %v2528_v54 = vmul.f32 0.03125, %v2518_v48 }
0x13e1   :  { %v2532_v21 = vsub.f32 %v2512_v58, %v2528_v54  ;;  %v2720_v58 = vld [vmem:[%s4616_s0 + $0x10] sm:$0xff] }
0x13e2   :  { %v2521_v42 = vpop.xlane.xlu1 %2520  ;;  %v3592_v41 = vpack.c.bf16 %v2721_v40, %v2720_v58 }
0x13e3   :  { %v2529_v44 = vmul.f32 0.03125, %v2521_v42  ;;  %v2536_v18 = vmul.f32 %v2532_v21, %v2532_v21 }
0x13e4   :  { %3593 = vmatprep.subr.bf16.mxu1 %v3592_v41 }
0x13e5   :  { %v2533_v45 = vsub.f32 %v2513_v55, %v2529_v44  ;;  %v2540_v23 = vsel %vm145_vm3, %v2536_v18, 0.0  ;;  %3595 = vmatpush3.bf16.msra.mxu1 %v3592_v41  ;;  %v2722_v55 = vld [vmem:[%s4616_s0 + $0x20] sm:$0xff] }
0x13e6   :  { %v3596_v37 = vpack.c.bf16 %v2723_v36, %v2722_v55 }
0x13e7   :  { %v2537_v46 = vmul.f32 %v2533_v45, %v2533_v45 }
0x13e8   :  { %3597 = vmatprep.subr.bf16.mxu1 %v3596_v37 }
0x13e9   :  { %v2543_v47 = vsel %vm145_vm3, %v2537_v46, 0.0  ;;  %3599 = vmatpush3.bf16.msra.mxu1 %v3596_v37 }
0x13ea   :  { %2544 = vadd.xlane.f32.xlu1 %v2543_v47  ;;  %3601 = vmatprep.subr.bf16.mxu1 %v3600_v63 }
0x13ed   :  { %3603 = vmatpush3.bf16.msra.mxu1 %v3600_v63 }
0x1477   :  { %v2545_v61 = vpop.xlane.xlu1 %2544 }
0x1478   :  { %v2553_v7 = vmul.f32 0.03125, %v2545_v61 }
0x147a   :  { %v2557_v13 = vadd.f32 1e-12, %v2553_v7 }
0x147c   :  { %3826 = vrsqrt.f32 %v2557_v13 }
0x1481   :  { %v3429_v1 = vpop.f32.mrb[20].mxu1 }
0x1482   :  { %v2503_v49 = vpop.f32.mrb[21].mxu1  ;;  %v2509_v38 = vadd.f32 %v3429_v1, %v3139_v31 }
0x1483   :  { %v2504_v43 = vadd.f32 %v3139_v31, %v2503_v49 }
0x1484   :  { %v2515_v4 = vadd.f32 %v3857_v51, %v2509_v38 }
0x1485   :  { %v2514_v0 = vadd.f32 %v3856_v50, %v2504_v43 }
0x1486   :  { %v2525_v52 = vsel %vm145_vm3, %v2515_v4, 0.0  ;;  %v3827_v2 = vpop.eup %3826 }
0x1487   :  { %v2522_v24 = vsel %vm145_vm3, %v2514_v0, 0.0  ;;  %v2565_v22 = vmul.f32 %v3827_v2, %v2533_v45 }
0x1488   :  { %2523 = vadd.xlane.f32.xlu0 %v2522_v24  ;;  %v3146_v24 = vld [vmem:[%s4617_s9] ss:$0 sm:$0xff] }
0x1489   :  { %v2576_v29 = vmul.f32 %v3144_v27, %v2565_v22  ;;  %v3151_v22 = vld [vmem:[%s4618_s13] ss:$0 sm:$0xff] }
0x148b   :  { %v4532_v31 = vadd.f32 %v3145_v30, %v2576_v29 }
0x148c   :  { %2526 = vadd.xlane.f32.xlu0 %v2525_v52 }
0x1490   :  { %2541 = vadd.xlane.f32.xlu0 %v2540_v23 }
0x1515   :  { %v2524_v8 = vpop.xlane.xlu0 %2523 }
0x1516   :  { %v2530_v10 = vmul.f32 0.03125, %v2524_v8 }
0x1518   :  { %v2534_v11 = vsub.f32 %v2514_v0, %v2530_v10 }
0x1519   :  { %v2527_v14 = vpop.xlane.xlu0 %2526 }
0x151a   :  { %v2531_v15 = vmul.f32 0.03125, %v2527_v14  ;;  %v2538_v16 = vmul.f32 %v2534_v11, %v2534_v11 }
0x151c   :  { %v2535_v3 = vsub.f32 %v2515_v4, %v2531_v15  ;;  %v2546_v17 = vsel %vm145_vm3, %v2538_v16, 0.0 }
0x151d   :  { %2547 = vadd.xlane.f32.xlu0 %v2546_v17  ;;  %v2542_v19 = vpop.xlane.xlu0 %2541 }
0x151e   :  { %v2552_v9 = vmul.f32 0.03125, %v2542_v19  ;;  %v2539_v20 = vmul.f32 %v2535_v3, %v2535_v3 }
0x1520   :  { %v2556_v60 = vadd.f32 1e-12, %v2552_v9  ;;  %v2549_v62 = vsel %vm145_vm3, %v2539_v20, 0.0 }
0x1521   :  { %2550 = vadd.xlane.f32.xlu1 %v2549_v62 }
0x1522   :  { %3828 = vrsqrt.f32 %v2556_v60 }
0x152c   :  { %v3829_v28 = vpop.eup %3828 }
0x152d   :  { %v2564_v25 = vmul.f32 %v3829_v28, %v2532_v21 }
0x152f   :  { %v2575_v34 = vmul.f32 %v3144_v27, %v2564_v25 }
0x1531   :  { %v4530_v33 = vadd.f32 %v3145_v30, %v2575_v34 }
0x1533   :  { %3438 = vmatprep.mubr.msk.f32.mxu0 %vm145_vm3, %v4530_v33 }
0x1534   :  { %3439 = vmatmul.mubr.msk.f32.vlgmr.msra.gmra.mrb[22].mxu0 %vm145_vm3, %v4532_v31 }
0x15aa   :  { %v2548_v42 = vpop.xlane.xlu0 %2547 }
0x15ab   :  { %v2554_v44 = vmul.f32 0.03125, %v2548_v42 }
0x15ad   :  { %v2558_v45 = vadd.f32 1e-12, %v2554_v44 }
0x15ae   :  { %v2551_v46 = vpop.xlane.xlu1 %2550 }
0x15af   :  { %3830 = vrsqrt.f32 %v2558_v45  ;;  %v2555_v47 = vmul.f32 0.03125, %v2551_v46 }
0x15b1   :  { %v2559_v48 = vadd.f32 1e-12, %v2555_v47 }
0x15b3   :  { %3832 = vrsqrt.f32 %v2559_v48 }
0x15b9   :  { %v3831_v1 = vpop.eup %3830 }
0x15ba   :  { %v2566_v49 = vmul.f32 %v3831_v1, %v2534_v11  ;;  %v2909_v1 = vld [vmem:[%s4100_s29] sm:$0xff] }
0x15bc   :  { %v2577_v54 = vmul.f32 %v3144_v27, %v2566_v49  ;;  %v2910_v49 = vld [vmem:[%s4100_s29 + $0x8] sm:$0xff] }
0x15bd   :  { %v3833_v38 = vpop.eup %3832 }
0x15be   :  { %v2588_v43 = vadd.f32 %v3145_v30, %v2577_v54  ;;  %v2567_v50 = vmul.f32 %v3833_v38, %v2535_v3  ;;  %v3604_v54 = vpack.c.bf16 %v2910_v49, %v2909_v1  ;;  %v2911_v38 = vld [vmem:[%s4100_s29 + $0x10] sm:$0xff] }
0x15c0   :  { %3441 = vmatprep.mubr.msk.f32.mxu0 %vm145_vm3, %v2588_v43  ;;  %v2578_v0 = vmul.f32 %v3144_v27, %v2567_v50  ;;  %3605 = vmatprep.subr.bf16.mxu0 %v3604_v54 }
0x15c1   :  { %3607 = vmatpush3.bf16.msra.mxu0 %v3604_v54 }
0x15c2   :  { %v2589_v21 = vadd.f32 %v3145_v30, %v2578_v0 }
0x15c4   :  { %3442 = vmatmul.mubr.msk.f32.gmra.mrb[24].mxu0 %vm145_vm3, %v2589_v21 }
0x1607   :  { %v3440_v51 = vpop.f32.mrb[22].mxu0 }
0x1608   :  { %v2685_v4 = vadd.f32 %v3440_v51, %v3146_v24  ;;  %v2679_v52 = vpop.f32.mrb[23].mxu0 }
0x1609   :  { %v2680_v18 = vadd.f32 %v3146_v24, %v2679_v52 }
0x160a   :  { %v2703_v23 = vmul.f32 0.70710677, %v2685_v4  ;;  %v2699_v61 = vmul.f32 0.5, %v2685_v4 }
0x160b   :  { %v2702_v6 = vmul.f32 0.70710677, %v2680_v18  ;;  %v2698_v57 = vmul.f32 0.5, %v2680_v18 }
0x160c   :  { %3834 = verf.f32 %v2703_v23 }
0x160d   :  { %3836 = verf.f32 %v2702_v6 }
0x1616   :  { %v3835_v26 = vpop.eup %3834 }
0x1617   :  { %v3837_v53 = vpop.eup %3836  ;;  %v2711_v56 = vadd.f32 1.0, %v3835_v26 }
0x1618   :  { %v2710_v59 = vadd.f32 1.0, %v3837_v53 }
0x1619   :  { %v2715_v8 = vmul.f32 %v2711_v56, %v2699_v61 }
0x161a   :  { %v2714_v7 = vmul.f32 %v2710_v59, %v2698_v57 }
0x161c   :  { %3460 = vmatprep.mubr.msk.f32.mxu1 %vm2733_vm12, %v2714_v7 }
0x161d   :  { %3461 = vmatmul.mubr.msk.f32.vlgmr.msra.gmra.mrb[22].mxu1 %vm2733_vm12, %v2715_v8 }
0x1697   :  { %v3443_v10 = vpop.f32.mrb[24].mxu0 }
0x1698   :  { %v2695_v11 = vadd.f32 %v3443_v10, %v3146_v24  ;;  %v2689_v13 = vpop.f32.mrb[25].mxu0  ;;  %v3156_v10 = vld [vmem:[%s4619_s17] ss:$0 sm:$0xff] }
0x1699   :  { %v2690_v14 = vadd.f32 %v3146_v24, %v2689_v13 }
0x169a   :  { %v2705_v15 = vmul.f32 0.70710677, %v2695_v11  ;;  %v2701_v60 = vmul.f32 0.5, %v2695_v11 }
0x169b   :  { %v2704_v16 = vmul.f32 0.70710677, %v2690_v14  ;;  %v2700_v9 = vmul.f32 0.5, %v2690_v14 }
0x169c   :  { %3838 = verf.f32 %v2705_v15 }
0x169d   :  { %3840 = verf.f32 %v2704_v16  ;;  %v3157_v16 = vld [vmem:[%s4095_s3] ss:$0 sm:$0xff] }
0x16a6   :  { %v3839_v3 = vpop.eup %3838 }
0x16a7   :  { %v3841_v17 = vpop.eup %3840  ;;  %v2713_v19 = vadd.f32 1.0, %v3839_v3 }
0x16a8   :  { %v2712_v20 = vadd.f32 1.0, %v3841_v17 }
0x16a9   :  { %v2717_v2 = vmul.f32 %v2713_v19, %v2701_v60 }
0x16aa   :  { %v2716_v62 = vmul.f32 %v2712_v20, %v2700_v9 }
0x16ac   :  { %3463 = vmatprep.mubr.msk.f32.mxu1 %vm2733_vm12, %v2716_v62 }
0x16ad   :  { %3464 = vmatmul.mubr.msk.f32.gmra.mrb[24].mxu1 %vm2733_vm12, %v2717_v2 }
0x16f0   :  { %v3462_v27 = vpop.f32.mrb[22].mxu1 }
0x16f1   :  { %v2818_v28 = vadd.f32 %v3462_v27, %v3151_v22  ;;  %v2812_v25 = vpop.f32.mrb[23].mxu1 }
0x16f2   :  { %v2813_v29 = vadd.f32 %v3151_v22, %v2812_v25 }
0x16f3   :  { %v2832_v34 = vadd.f32 %v2818_v28, %v4532_v31 }
0x16f4   :  { %v2831_v30 = vadd.f32 %v2813_v29, %v4530_v33 }
0x16f5   :  { %v2838_v32 = vsel %vm145_vm3, %v2832_v34, 0.0 }
0x16f6   :  { %2839 = vadd.xlane.f32.xlu1 %v2838_v32  ;;  %v2835_v5 = vsel %vm145_vm3, %v2831_v30, 0.0 }
0x16f7   :  { %2836 = vadd.xlane.f32.xlu0 %v2835_v5 }
0x1780   :  { %v3465_v39 = vpop.f32.mrb[24].mxu1 }
0x1781   :  { %v2828_v58 = vadd.f32 %v3465_v39, %v3151_v22  ;;  %v2822_v40 = vpop.f32.mrb[25].mxu1  ;;  %v3158_v39 = vld [vmem:[%s4105_s4] ss:$0 sm:$0xff] }
0x1782   :  { %v2823_v41 = vadd.f32 %v3151_v22, %v2822_v40 }
0x1783   :  { %v2834_v55 = vadd.f32 %v2828_v58, %v2589_v21  ;;  %v2840_v36 = vpop.xlane.xlu1 %2839 }
0x1784   :  { %v2833_v37 = vadd.f32 %v2823_v41, %v2588_v43  ;;  %v2848_v35 = vmul.f32 0.03125, %v2840_v36  ;;  %v2837_v12 = vpop.xlane.xlu0 %2836  ;;  %v2912_v43 = vld [vmem:[%s4100_s29 + $0x18] sm:$0xff]  ;;  %s3931_s29 = smov [#allocation4]  }
0x1785   :  { %v2847_v31 = vmul.f32 0.03125, %v2837_v12  ;;  %v2844_v33 = vsel %vm145_vm3, %v2834_v55, 0.0  ;;  %v3608_v50 = vpack.c.bf16 %v2912_v43, %v2911_v38  ;;  %s3026_s3 = sshll.u32 %s3931_s29, 4  ;;  %s3027_s3 = int_to_ptr.vmem [resolvable:$true] %s3026_s3 }
0x1786   :  { %v2852_v63 = vsub.f32 %v2832_v34, %v2848_v35  ;;  %2845 = vadd.xlane.f32.xlu1 %v2844_v33  ;;  %v2841_v42 = vsel %vm145_vm3, %v2833_v37, 0.0  ;;  %s3858_s21 = scalar_lea.vmem %s3027_s3, 32  ;;  %p3863_p1 = scmp.lt.s32.totalorder %s3027_s3, %s3027_s3 }
0x1787   :  { %v2851_v44 = vsub.f32 %v2831_v30, %v2847_v31  ;;  %2842 = vadd.xlane.f32.xlu0 %v2841_v42  ;;  %3609 = vmatprep.subr.bf16.mxu0 %v3608_v50  ;;  %p3859_p0 = scmp.ne.s32.totalorder %s3027_s3, %s3858_s21  ;;  %p3864_p2 = scmp.lt.s32.totalorder %s3858_s21, %s3858_s21 }
0x1788   :  { %v2856_v45 = vmul.f32 %v2852_v63, %v2852_v63  ;;  %3611 = vmatpush3.bf16.msra.mxu0 %v3608_v50 }
0x1789   :  { %v2855_v46 = vmul.f32 %v2851_v44, %v2851_v44  ;;  %p3865_p3 = por %p3864_p2, %p3863_p1 }
0x178a   :  { %v2862_v47 = vsel %vm145_vm3, %v2856_v45, 0.0 }
0x178b   :  { %2863 = vadd.xlane.f32.xlu1 %v2862_v47  ;;  %v2859_v48 = vsel %vm145_vm3, %v2855_v46, 0.0  ;;  %p3866_p4 = pnand %p3865_p3, %p3859_p0 }
0x178c   :  { %2860 = vadd.xlane.f32.xlu0 %v2859_v48 }
0x1813   :  { %v2846_v0 = vpop.xlane.xlu1 %2845 }
0x1814   :  { %v2850_v21 = vmul.f32 0.03125, %v2846_v0  ;;  %v2843_v24 = vpop.xlane.xlu0 %2842 }
0x1815   :  { %v2849_v51 = vmul.f32 0.03125, %v2843_v24 }
0x1816   :  { %v2854_v4 = vsub.f32 %v2834_v55, %v2850_v21 }
0x1817   :  { %v2853_v52 = vsub.f32 %v2833_v37, %v2849_v51 }
0x1818   :  { %v2864_v18 = vpop.xlane.xlu1 %2863  ;;  %v2858_v23 = vmul.f32 %v2854_v4, %v2854_v4 }
0x1819   :  { %v2872_v6 = vmul.f32 0.03125, %v2864_v18  ;;  %v2861_v26 = vpop.xlane.xlu0 %2860  ;;  %v2857_v53 = vmul.f32 %v2853_v52, %v2853_v52 }
0x181a   :  { %v2871_v56 = vmul.f32 0.03125, %v2861_v26  ;;  %v2868_v57 = vsel %vm145_vm3, %v2858_v23, 0.0 }
0x181b   :  { %v2876_v59 = vadd.f32 1e-12, %v2872_v6  ;;  %2869 = vadd.xlane.f32.xlu1 %v2868_v57  ;;  %v2865_v61 = vsel %vm145_vm3, %v2857_v53, 0.0 }
0x181c   :  { %v2875_v7 = vadd.f32 1e-12, %v2871_v56  ;;  %2866 = vadd.xlane.f32.xlu0 %v2865_v61 }
0x181d   :  { %3842 = vrsqrt.f32 %v2876_v59 }
0x181e   :  { %3844 = vrsqrt.f32 %v2875_v7 }
0x1827   :  { %v3843_v8 = vpop.eup %3842 }
0x1828   :  { %v3845_v11 = vpop.eup %3844  ;;  %v2884_v13 = vmul.f32 %v3843_v8, %v2852_v63 }
0x1829   :  { %v2883_v14 = vmul.f32 %v3845_v11, %v2851_v44 }
0x182a   :  { %v2895_v15 = vmul.f32 %v3156_v10, %v2884_v13 }
0x182b   :  { %v2894_v3 = vmul.f32 %v3156_v10, %v2883_v14 }
0x182c   :  { %v2906_v19 = vadd.f32 %v3157_v16, %v2895_v15 }
0x182d   :  { %v2905_v17 = vadd.f32 %v3157_v16, %v2894_v3 }
0x182f   :  { %3474 = vmatprep.mubr.msk.f32.mxu0 %vm145_vm3, %v2905_v17 }
0x1830   :  { %3475 = vmatmul.mubr.msk.f32.vlgmr.msra.gmra.mrb[26].mxu0 %vm145_vm3, %v2906_v19 }
0x18a8   :  { %v2870_v9 = vpop.xlane.xlu1 %2869 }
0x18a9   :  { %v2874_v20 = vmul.f32 0.03125, %v2870_v9  ;;  %v2867_v60 = vpop.xlane.xlu0 %2866 }
0x18aa   :  { %v2873_v62 = vmul.f32 0.03125, %v2867_v60 }
0x18ab   :  { %v2878_v2 = vadd.f32 1e-12, %v2874_v20 }
0x18ac   :  { %v2877_v22 = vadd.f32 1e-12, %v2873_v62 }
0x18ad   :  { %3846 = vrsqrt.f32 %v2878_v2 }
0x18ae   :  { %3848 = vrsqrt.f32 %v2877_v22 }
0x18b7   :  { %v3847_v27 = vpop.eup %3846 }
0x18b8   :  { %v3849_v28 = vpop.eup %3848  ;;  %v2886_v25 = vmul.f32 %v3847_v27, %v2854_v4 }
0x18b9   :  { %v2885_v29 = vmul.f32 %v3849_v28, %v2853_v52 }
0x18ba   :  { %v2897_v34 = vmul.f32 %v3156_v10, %v2886_v25 }
0x18bb   :  { %v2896_v30 = vmul.f32 %v3156_v10, %v2885_v29 }
0x18bc   :  { %v2908_v5 = vadd.f32 %v3157_v16, %v2897_v34 }
0x18bd   :  { %v2907_v32 = vadd.f32 %v3157_v16, %v2896_v30 }
0x18bf   :  { %3477 = vmatprep.mubr.msk.f32.mxu0 %vm145_vm3, %v2907_v32 }
0x18c0   :  { %3478 = vmatmul.mubr.msk.f32.gmra.mrb[28].mxu0 %vm145_vm3, %v2908_v5 }
0x1903   :  { %v3476_v58 = vpop.f32.mrb[26].mxu0 }
0x1904   :  { %v2998_v40 = vpop.f32.mrb[27].mxu0 }
0x1905   :  { %v2999_v41 = vadd.f32 %v3158_v39, %v2998_v40 }
0x1907   :  { %3850 = vtanh.f32 %v2999_v41 }
0x1911   :  { %v3851_v55 = vpop.eup %3850 }
0x1912   :  { %3018 = vst.msk [vmem:[#allocation4] sm:$0x1] %vm3017_vm13, %v3851_v55 }
0x1993   :  { %v3479_v36 = vpop.f32.mrb[28].mxu0 }
0x1994   :  { %v3007_v37 = vpop.f32.mrb[29].mxu0 }
0x1995   :  { %v3008_v35 = vadd.f32 %v3158_v39, %v3007_v37 }
0x1997   :  { %3852 = vtanh.f32 %v3008_v35 }
0x19a1   :  { %v3853_v12 = vpop.eup %3852 }
0x19a2   :  { %3019 = vst.msk [vmem:[#allocation4 + $0x1] sm:$0x1] %vm3017_vm13, %v3853_v12 }
0x19a3   :  { %3869 = shalt.err (!%p3866_p4)
}
0x19a4   :  { %s3870_s4 = scalar_lea.hbm %s4110_s25, 32 }
0x19a5   :  { %p3871_p5 = scmp.ne.s32.totalorder %s4110_s25, %s3870_s4  ;;  %p3874_p6 = scmp.lt.u32.totalorder %s3870_s4, %s4110_s25 }
0x19a7   :  { %p3876_p7 = pnand %p3874_p6, %p3871_p5 }
0x19a9   :  { %3879 = shalt.err (!%p3876_p7)
}
0x19aa   :  { %3029 = dma.vmem_to_hbm [thread:$0]  %s3027_s3, 32, %s4110_s25, [#allocation5]  }
0x19ab   :  { %3880 = dma.done.wait [#allocation5], 32  }
0x19ac   :  { %3881 = vsyncadd [#allocation5], 4294967264 }
0x19ad   :  { %3033 = vsyncpa [#allocation5], 1 }

</bundles_post_ra>
